<compile_context>
chip_gen: v7x
topology: tpu7x:2x2x1
jax: 0.10.0
libtpu: 0.0.40
codegen_flags: <defaults>
</compile_context>

<pallas_src>
import jax
import jax.numpy as jnp
from jax.experimental import pallas as pl
from jax.experimental.pallas import tpu as pltpu

BN_EPS = 1e-5  # torch.nn.BatchNorm1d default eps

# Layer sizes (in_features, out_features), PyTorch order.
_CFG = [(50, 100), (100, 50), (50, 50), (50, 2)]


def _vmem_spec():
    return pl.BlockSpec(memory_space=pltpu.MemorySpace.VMEM)


# ------------------------------ Pallas kernel -------------------------------

def mlp_kernel(x_ref, w0_ref, w1_ref, w2_ref, w3_ref, b3_ref, o_ref):
    """Fused BaseNetMiniboone forward in natural (batch, features) layout.

    x_ref : (N, 50)        input batch
    wK    : (in_K, out_K)  weights pre-transposed to feed the MXU directly
    b3    : (1, 2)         final-layer bias (hidden biases cancel under BN)
    o_ref : (N, 2)         softmax probabilities
    """
    h = x_ref[...]                                            # (N, 50) f32

    # Three hidden blocks: Linear (bias-free; the bias is algebraically
    # cancelled by the affine-free batch-stat BatchNorm that follows) ->
    # BatchNorm1d(batch stats, biased variance) -> ReLU.
    for w_ref in (w0_ref, w1_ref, w2_ref):
        y = jnp.dot(h, w_ref[...], preferred_element_type=jnp.float32)  # (N, out)
        # Single-pass batch statistics over the batch axis, clamped so f32
        # cancellation in E[y^2] - mean^2 can never drive rsqrt to NaN.
        mean = jnp.mean(y, axis=0, keepdims=True)             # (1, out)
        mean_sq = jnp.mean(y * y, axis=0, keepdims=True)      # (1, out)
        var = jnp.maximum(mean_sq - mean * mean, 0.0)         # biased variance
        h = jnp.maximum((y - mean) * jax.lax.rsqrt(var + BN_EPS), 0.0)

    # Final Linear(50, 2) + numerically-stable softmax over the class axis.
    logits = jnp.dot(h, w3_ref[...], preferred_element_type=jnp.float32)
    logits = logits + b3_ref[...]                             # (N, 2)
    z = logits - jnp.max(logits, axis=-1, keepdims=True)
    e = jnp.exp(z)
    denom = jnp.sum(e, axis=-1, keepdims=True)
    # EUP reciprocal instead of a VPU divide; exact (approx=True would cost
    # ~1e-3 relative accuracy for no measurable win in a launch-bound kernel).
    o_ref[...] = e * pl.reciprocal(denom, approx=False)


# --------------------------- pallas_call wrapper -----------------------------

@jax.jit
def basenet_miniboone_forward(x, params):
    """x: (N, 50) float32.  Returns softmax probabilities (N, 2)."""
    (w0, _b0), (w1, _b1), (w2, _b2), (w3, b3) = params
    n = x.shape[0]

    # Advisory cost hint so XLA schedules around the custom call sensibly.
    matmul_flops = 2 * n * sum(fi * fo for fi, fo in _CFG)            # 25200*N
    weight_elems = sum(fi * fo for fi, fo in _CFG)
    cost = pl.CostEstimate(
        flops=matmul_flops,
        transcendentals=200 + 3 * n,                 # rsqrt(200) + exp/recip
        bytes_accessed=4 * (n * 50 + n * 2 + weight_elems + 2),
    )

    return pl.pallas_call(
        mlp_kernel,
        out_shape=jax.ShapeDtypeStruct((n, 2), jnp.float32),
        in_specs=[_vmem_spec()] * 6,
        out_specs=_vmem_spec(),
        cost_estimate=cost,
    )(x.astype(jnp.float32), w0, w1, w2, w3, b3)


# ------------------------------ parameter init -------------------------------

def init_params(key):
    """Deterministic torch-default-style init (U(-1/sqrt(fan_in), +1/sqrt(fan_in))).

    Weights are stored pre-transposed as (in_features, out_features) so the
    kernel feeds the MXU with plain `h @ w` and no transpose anywhere; this is
    mathematically identical to PyTorch's x @ W.T with W of shape (out, in).
    Biases are stored as (1, out) for direct broadcasting.  The hidden-layer
    biases are only consumed by the pure-JAX reference (they cancel under the
    affine-free batch-stat BatchNorm in the kernel).
    """
    params = []
    for fan_in, fan_out in _CFG:
        key, k_w, k_b = jax.random.split(key, 3)
        bound = 1.0 / float(fan_in) ** 0.5
        w = jax.random.uniform(k_w, (fan_in, fan_out), jnp.float32, -bound, bound)
        b = jax.random.uniform(k_b, (1, fan_out), jnp.float32, -bound, bound)
        params.append((w, b))
    return params


# --------------------------- pure-JAX reference ------------------------------

def _ref_forward(x, params):
    """Full module semantics, biases included, two-pass biased variance."""
    (w0, b0), (w1, b1), (w2, b2), (w3, b3) = params
    h = x.astype(jnp.float32)
    for w, b in ((w0, b0), (w1, b1), (w2, b2)):
        y = h @ w + b                                         # Linear with bias
        mean = jnp.mean(y, axis=0)
        var = jnp.mean(jnp.square(y - mean), axis=0)          # biased (train BN)
        h = jnp.maximum((y - mean) / jnp.sqrt(var + BN_EPS), 0.0)
    logits = h @ w3 + b3
    return jax.nn.softmax(logits, axis=-1)


if __name__ == "__main__":
    key = jax.random.PRNGKey(0)
    kx, kp = jax.random.split(key)
    # MiniBooNE-style input: 50 features.  Batch of 128 keeps the sublane
    # dimension fully tiled and gives BatchNorm a real batch while staying
    # tiny.  (On v6e/v7x a 256-512 batch would fill the MXU better; the
    # kernel needs no change for that.)
    x = jax.random.normal(kx, (128, 50), jnp.float32)
    params = init_params(kp)

    out = jax.block_until_ready(basenet_miniboone_forward(x, params))

    assert out.shape == (128, 2), out.shape
    assert bool(jnp.all(jnp.isfinite(out)))
    assert bool(jnp.allclose(jnp.sum(out, axis=-1), 1.0, atol=1e-5))

    ref = _ref_forward(x, params)
    assert bool(jnp.allclose(out, ref, atol=1e-4, rtol=1e-4))

    print("KERNEL_OK")
</pallas_src>

<mosaic_0001>
module attributes {stable_mosaic.version = 11 : i64} {
  func.func @mlp_kernel(%arg0: memref<128x50xf32, #tpu.memory_space<vmem>>, %arg1: memref<50x100xf32, #tpu.memory_space<vmem>>, %arg2: memref<100x50xf32, #tpu.memory_space<vmem>>, %arg3: memref<50x50xf32, #tpu.memory_space<vmem>>, %arg4: memref<50x2xf32, #tpu.memory_space<vmem>>, %arg5: memref<1x2xf32, #tpu.memory_space<vmem>>, %arg6: memref<128x2xf32, #tpu.memory_space<vmem>>) attributes {dimension_semantics = [], scalar_prefetch = 0 : i64, scratch_operands = 0 : i64, tpu.core_type = #tpu.core_type<tc>} {
    %c0 = arith.constant 0 : index
    %c0_0 = arith.constant 0 : index
    %0 = vector.load %arg0[%c0, %c0_0] : memref<128x50xf32, #tpu.memory_space<vmem>>, vector<128x50xf32>
    %c0_1 = arith.constant 0 : index
    %c0_2 = arith.constant 0 : index
    %1 = vector.load %arg1[%c0_1, %c0_2] : memref<50x100xf32, #tpu.memory_space<vmem>>, vector<50x100xf32>
    %cst = arith.constant dense<0.000000e+00> : vector<128x100xf32>
    %2 = tpu.matmul %0, %1, %cst {dimension_numbers = #tpu.dot_dimension_numbers<[1], [0], [0], [1], [0, 0, 1, 1], [], []>} : vector<128x50xf32>, vector<50x100xf32>, vector<128x100xf32> -> vector<128x100xf32>
    %cst_3 = arith.constant dense<0.000000e+00> : vector<100xf32>
    %3 = vector.multi_reduction <add>, %2, %cst_3 [0] : vector<128x100xf32> to vector<100xf32>
    %4 = vector.shape_cast %3 : vector<100xf32> to vector<1x100xf32>
    %cst_4 = arith.constant 1.280000e+02 : f32
    %5 = vector.broadcast %cst_4 : f32 to vector<1x100xf32>
    %6 = arith.divf %4, %5 : vector<1x100xf32>
    %7 = arith.mulf %2, %2 : vector<128x100xf32>
    %cst_5 = arith.constant dense<0.000000e+00> : vector<100xf32>
    %8 = vector.multi_reduction <add>, %7, %cst_5 [0] : vector<128x100xf32> to vector<100xf32>
    %9 = vector.shape_cast %8 : vector<100xf32> to vector<1x100xf32>
    %cst_6 = arith.constant 1.280000e+02 : f32
    %10 = vector.broadcast %cst_6 : f32 to vector<1x100xf32>
    %11 = arith.divf %9, %10 : vector<1x100xf32>
    %12 = arith.mulf %6, %6 : vector<1x100xf32>
    %13 = arith.subf %11, %12 : vector<1x100xf32>
    %cst_7 = arith.constant 0.000000e+00 : f32
    %14 = vector.broadcast %cst_7 : f32 to vector<1x100xf32>
    %15 = arith.maximumf %13, %14 : vector<1x100xf32>
    %16 = vector.broadcast %6 : vector<1x100xf32> to vector<128x100xf32>
    %17 = arith.subf %2, %16 : vector<128x100xf32>
    %cst_8 = arith.constant 9.99999974E-6 : f32
    %18 = vector.broadcast %cst_8 : f32 to vector<1x100xf32>
    %19 = arith.addf %15, %18 : vector<1x100xf32>
    %20 = math.rsqrt %19 : vector<1x100xf32>
    %21 = vector.broadcast %20 : vector<1x100xf32> to vector<128x100xf32>
    %22 = arith.mulf %17, %21 : vector<128x100xf32>
    %cst_9 = arith.constant 0.000000e+00 : f32
    %23 = vector.broadcast %cst_9 : f32 to vector<128x100xf32>
    %24 = arith.maximumf %22, %23 : vector<128x100xf32>
    %c0_10 = arith.constant 0 : index
    %c0_11 = arith.constant 0 : index
    %25 = vector.load %arg2[%c0_10, %c0_11] : memref<100x50xf32, #tpu.memory_space<vmem>>, vector<100x50xf32>
    %cst_12 = arith.constant dense<0.000000e+00> : vector<128x50xf32>
    %26 = tpu.matmul %24, %25, %cst_12 {dimension_numbers = #tpu.dot_dimension_numbers<[1], [0], [0], [1], [0, 0, 1, 1], [], []>} : vector<128x100xf32>, vector<100x50xf32>, vector<128x50xf32> -> vector<128x50xf32>
    %cst_13 = arith.constant dense<0.000000e+00> : vector<50xf32>
    %27 = vector.multi_reduction <add>, %26, %cst_13 [0] : vector<128x50xf32> to vector<50xf32>
    %28 = vector.shape_cast %27 : vector<50xf32> to vector<1x50xf32>
    %cst_14 = arith.constant 1.280000e+02 : f32
    %29 = vector.broadcast %cst_14 : f32 to vector<1x50xf32>
    %30 = arith.divf %28, %29 : vector<1x50xf32>
    %31 = arith.mulf %26, %26 : vector<128x50xf32>
    %cst_15 = arith.constant dense<0.000000e+00> : vector<50xf32>
    %32 = vector.multi_reduction <add>, %31, %cst_15 [0] : vector<128x50xf32> to vector<50xf32>
    %33 = vector.shape_cast %32 : vector<50xf32> to vector<1x50xf32>
    %cst_16 = arith.constant 1.280000e+02 : f32
    %34 = vector.broadcast %cst_16 : f32 to vector<1x50xf32>
    %35 = arith.divf %33, %34 : vector<1x50xf32>
    %36 = arith.mulf %30, %30 : vector<1x50xf32>
    %37 = arith.subf %35, %36 : vector<1x50xf32>
    %cst_17 = arith.constant 0.000000e+00 : f32
    %38 = vector.broadcast %cst_17 : f32 to vector<1x50xf32>
    %39 = arith.maximumf %37, %38 : vector<1x50xf32>
    %40 = vector.broadcast %30 : vector<1x50xf32> to vector<128x50xf32>
    %41 = arith.subf %26, %40 : vector<128x50xf32>
    %cst_18 = arith.constant 9.99999974E-6 : f32
    %42 = vector.broadcast %cst_18 : f32 to vector<1x50xf32>
    %43 = arith.addf %39, %42 : vector<1x50xf32>
    %44 = math.rsqrt %43 : vector<1x50xf32>
    %45 = vector.broadcast %44 : vector<1x50xf32> to vector<128x50xf32>
    %46 = arith.mulf %41, %45 : vector<128x50xf32>
    %cst_19 = arith.constant 0.000000e+00 : f32
    %47 = vector.broadcast %cst_19 : f32 to vector<128x50xf32>
    %48 = arith.maximumf %46, %47 : vector<128x50xf32>
    %c0_20 = arith.constant 0 : index
    %c0_21 = arith.constant 0 : index
    %49 = vector.load %arg3[%c0_20, %c0_21] : memref<50x50xf32, #tpu.memory_space<vmem>>, vector<50x50xf32>
    %cst_22 = arith.constant dense<0.000000e+00> : vector<128x50xf32>
    %50 = tpu.matmul %48, %49, %cst_22 {dimension_numbers = #tpu.dot_dimension_numbers<[1], [0], [0], [1], [0, 0, 1, 1], [], []>} : vector<128x50xf32>, vector<50x50xf32>, vector<128x50xf32> -> vector<128x50xf32>
    %cst_23 = arith.constant dense<0.000000e+00> : vector<50xf32>
    %51 = vector.multi_reduction <add>, %50, %cst_23 [0] : vector<128x50xf32> to vector<50xf32>
    %52 = vector.shape_cast %51 : vector<50xf32> to vector<1x50xf32>
    %cst_24 = arith.constant 1.280000e+02 : f32
    %53 = vector.broadcast %cst_24 : f32 to vector<1x50xf32>
    %54 = arith.divf %52, %53 : vector<1x50xf32>
    %55 = arith.mulf %50, %50 : vector<128x50xf32>
    %cst_25 = arith.constant dense<0.000000e+00> : vector<50xf32>
    %56 = vector.multi_reduction <add>, %55, %cst_25 [0] : vector<128x50xf32> to vector<50xf32>
    %57 = vector.shape_cast %56 : vector<50xf32> to vector<1x50xf32>
    %cst_26 = arith.constant 1.280000e+02 : f32
    %58 = vector.broadcast %cst_26 : f32 to vector<1x50xf32>
    %59 = arith.divf %57, %58 : vector<1x50xf32>
    %60 = arith.mulf %54, %54 : vector<1x50xf32>
    %61 = arith.subf %59, %60 : vector<1x50xf32>
    %cst_27 = arith.constant 0.000000e+00 : f32
    %62 = vector.broadcast %cst_27 : f32 to vector<1x50xf32>
    %63 = arith.maximumf %61, %62 : vector<1x50xf32>
    %64 = vector.broadcast %54 : vector<1x50xf32> to vector<128x50xf32>
    %65 = arith.subf %50, %64 : vector<128x50xf32>
    %cst_28 = arith.constant 9.99999974E-6 : f32
    %66 = vector.broadcast %cst_28 : f32 to vector<1x50xf32>
    %67 = arith.addf %63, %66 : vector<1x50xf32>
    %68 = math.rsqrt %67 : vector<1x50xf32>
    %69 = vector.broadcast %68 : vector<1x50xf32> to vector<128x50xf32>
    %70 = arith.mulf %65, %69 : vector<128x50xf32>
    %cst_29 = arith.constant 0.000000e+00 : f32
    %71 = vector.broadcast %cst_29 : f32 to vector<128x50xf32>
    %72 = arith.maximumf %70, %71 : vector<128x50xf32>
    %c0_30 = arith.constant 0 : index
    %c0_31 = arith.constant 0 : index
    %73 = vector.load %arg4[%c0_30, %c0_31] : memref<50x2xf32, #tpu.memory_space<vmem>>, vector<50x2xf32>
    %cst_32 = arith.constant dense<0.000000e+00> : vector<128x2xf32>
    %74 = tpu.matmul %72, %73, %cst_32 {dimension_numbers = #tpu.dot_dimension_numbers<[1], [0], [0], [1], [0, 0, 1, 1], [], []>} : vector<128x50xf32>, vector<50x2xf32>, vector<128x2xf32> -> vector<128x2xf32>
    %c0_33 = arith.constant 0 : index
    %c0_34 = arith.constant 0 : index
    %75 = vector.load %arg5[%c0_33, %c0_34] : memref<1x2xf32, #tpu.memory_space<vmem>>, vector<1x2xf32>
    %76 = vector.broadcast %75 : vector<1x2xf32> to vector<128x2xf32>
    %77 = arith.addf %74, %76 : vector<128x2xf32>
    %cst_35 = arith.constant dense<0xFF800000> : vector<128xf32>
    %78 = vector.multi_reduction <maximumf>, %77, %cst_35 [1] : vector<128x2xf32> to vector<128xf32>
    %79 = vector.shape_cast %78 : vector<128xf32> to vector<128x1xf32>
    %80 = vector.broadcast %79 : vector<128x1xf32> to vector<128x2xf32>
    %81 = arith.subf %77, %80 : vector<128x2xf32>
    %82 = math.exp %81 : vector<128x2xf32>
    %cst_36 = arith.constant dense<0.000000e+00> : vector<128xf32>
    %83 = vector.multi_reduction <add>, %82, %cst_36 [1] : vector<128x2xf32> to vector<128xf32>
    %84 = vector.shape_cast %83 : vector<128xf32> to vector<128x1xf32>
    %85 = tpu.reciprocal %84 : vector<128x1xf32> -> vector<128x1xf32>
    %86 = vector.broadcast %85 : vector<128x1xf32> to vector<128x2xf32>
    %87 = arith.mulf %82, %86 : vector<128x2xf32>
    %c0_37 = arith.constant 0 : index
    %c0_38 = arith.constant 0 : index
    %88 = vector.load %arg6[%c0_37, %c0_38] : memref<128x2xf32, #tpu.memory_space<vmem>>, vector<128x2xf32>
    tpu.vector_store %arg6[%c0_37, %c0_38], %87 {strides = array<i32>} : memref<128x2xf32, #tpu.memory_space<vmem>>, vector<128x2xf32>,
    return
  }
}

</mosaic_0001>

<bundles_post_ra>
// kernel: basenet_miniboone_forward.1
= control target key start
LH: loop header
LB: loop body
LE: loop exit
PB: predicated region body
PF: predicated region fallthrough
CT: control target
= control target key end

     0   :  { %vm46_vm0 = vcmask 408576   ;;  %vm95_vm1 = vcmask 1041408   ;;  %vm452_vm2 = vcmask 1043456   ;;  %vm244_vm3 = vcmask 818176   ;;  %s2820_s1 = inlined_call_operand.vmem [shape: f32[50,100], index: 1, kind: input, shape index: {}]   ;;  %s2821_s0 = inlined_call_operand.vmem [shape: f32[128,50], index: 0, kind: input, shape index: {}]   ;;  %s2822_s2 = inlined_call_operand.vmem [shape: f32[100,50], index: 2, kind: input, shape index: {}]   ;;  %s2823_s3 = inlined_call_operand.vmem [shape: f32[50,50], index: 3, kind: input, shape index: {}]   ;;  %s2824_s4 = inlined_call_operand.vmem [shape: f32[50,2], index: 4, kind: input, shape index: {}]   ;;  %s2825_s5 = inlined_call_operand.vmem [shape: f32[1,2], index: 5, kind: input, shape index: {}]   ;;  %s2826_s6 = inlined_call_operand.vmem [shape: f32[128,2], index: 6, kind: output, shape index: {}]  }
   0x1   :  { %v39_v0 = vld [vmem:[%s2820_s1] sm:$0xff]  ;;  %v40_v1 = vld [vmem:[%s2820_s1 + $0x8] sm:$0xff]  ;;  %v41_v2 = vld [vmem:[%s2820_s1 + $0x10] sm:$0xff]  ;;  %vm1304_vm4 = vcmask 15360  }
   0x2   :  { %v1832_v3 = vpack.c.bf16 %v40_v1, %v39_v0  ;;  %v42_v4 = vld [vmem:[%s2820_s1 + $0x18] sm:$0xff]  ;;  %v43_v6 = vld [vmem:[%s2820_s1 + $0x20] sm:$0xff]  ;;  %v44_v7 = vld [vmem:[%s2820_s1 + $0x28] sm:$0xff] }
   0x3   :  { %v1836_v5 = vpack.c.bf16 %v42_v4, %v41_v2  ;;  %v23_v8 = vld [vmem:[%s2821_s0] sm:$0xff]  ;;  %v1840_v9 = vpack.c.bf16 %v44_v7, %v43_v6  ;;  %v45_v10 = vld [vmem:[%s2820_s1 + $0x30] sm:$0x3]  ;;  %v24_v11 = vld [vmem:[%s2821_s0 + $0x8] sm:$0xff] }
   0x4   :  { %1833 = vmatprep.subr.bf16.mxu0 %v1832_v3  ;;  %1682 = vmatprep.mubr.msk.f32.mxu0 %vm46_vm0, %v23_v8  ;;  %v25_v12 = vld [vmem:[%s2821_s0 + $0x10] sm:$0xff]  ;;  %v26_v13 = vld [vmem:[%s2821_s0 + $0x18] sm:$0xff]  ;;  %v27_v14 = vld [vmem:[%s2821_s0 + $0x20] sm:$0xff] }
   0x5   :  { %1835 = vmatpush3.bf16.msra.mxu0 %v1832_v3  ;;  %v28_v15 = vld [vmem:[%s2821_s0 + $0x28] sm:$0xff]  ;;  %v29_v16 = vld [vmem:[%s2821_s0 + $0x30] sm:$0xff]  ;;  %v30_v17 = vld [vmem:[%s2821_s0 + $0x38] sm:$0xff] }
   0x6   :  { %1837 = vmatprep.subr.bf16.mxu0 %v1836_v5  ;;  %v31_v18 = vld [vmem:[%s2821_s0 + $0x40] sm:$0xff]  ;;  %v32_v19 = vld [vmem:[%s2821_s0 + $0x48] sm:$0xff]  ;;  %v33_v20 = vld [vmem:[%s2821_s0 + $0x50] sm:$0xff] }
   0x7   :  { %v34_v21 = vld [vmem:[%s2821_s0 + $0x58] sm:$0xff]  ;;  %v35_v22 = vld [vmem:[%s2821_s0 + $0x60] sm:$0xff]  ;;  %v36_v23 = vld [vmem:[%s2821_s0 + $0x68] sm:$0xff] }
   0x8   :  { %v37_v24 = vld [vmem:[%s2821_s0 + $0x70] sm:$0xff]  ;;  %v38_v25 = vld [vmem:[%s2821_s0 + $0x78] sm:$0xff]  ;;  %v391_v26 = vld [vmem:[%s2822_s2] sm:$0xff] }
   0x9   :  { %1839 = vmatpush3.bf16.msra.mxu0 %v1836_v5  ;;  %v392_v27 = vld [vmem:[%s2822_s2 + $0x8] sm:$0xff]  ;;  %v393_v29 = vld [vmem:[%s2822_s2 + $0x10] sm:$0xff]  ;;  %v394_v30 = vld [vmem:[%s2822_s2 + $0x18] sm:$0xff] }
   0xa   :  { %1841 = vmatprep.subr.bf16.mxu0 %v1840_v9  ;;  %v1844_v28 = vpack.c.bf16 %v392_v27, %v391_v26  ;;  %v1848_v31 = vpack.c.bf16 %v394_v30, %v393_v29  ;;  %v395_v32 = vld [vmem:[%s2822_s2 + $0x20] sm:$0xff]  ;;  %v396_v33 = vld [vmem:[%s2822_s2 + $0x28] sm:$0xff]  ;;  %v397_v35 = vld [vmem:[%s2822_s2 + $0x30] sm:$0xff] }
   0xb   :  { %v1852_v34 = vpack.c.bf16 %v396_v33, %v395_v32  ;;  %v398_v36 = vld [vmem:[%s2822_s2 + $0x38] sm:$0xff]  ;;  %v399_v38 = vld [vmem:[%s2822_s2 + $0x40] sm:$0xff]  ;;  %v400_v39 = vld [vmem:[%s2822_s2 + $0x48] sm:$0xff] }
   0xc   :  { %1845 = vmatprep.subr.bf16.mxu1 %v1844_v28  ;;  %v1856_v37 = vpack.c.bf16 %v398_v36, %v397_v35  ;;  %v1860_v40 = vpack.c.bf16 %v400_v39, %v399_v38  ;;  %v401_v41 = vld [vmem:[%s2822_s2 + $0x50] sm:$0xff]  ;;  %v402_v42 = vld [vmem:[%s2822_s2 + $0x58] sm:$0xff]  ;;  %v403_v44 = vld [vmem:[%s2822_s2 + $0x60] sm:$0xf] }
   0xd   :  { %1843 = vmatpush3.bf16.msra.mxu0 %v1840_v9  ;;  %1847 = vmatpush3.bf16.msra.mxu1 %v1844_v28  ;;  %v1864_v43 = vpack.c.bf16 %v402_v42, %v401_v41 }
   0xe   :  { %1680 = vmatprep.subr.msk.mxu0 %vm95_vm1, %v45_v10  ;;  %1849 = vmatprep.subr.bf16.mxu1 %v1848_v31 }
  0x11   :  { %1681 = vmatpush3.msk.msra.mxu0 %vm95_vm1, %v45_v10  ;;  %1851 = vmatpush3.bf16.msra.mxu1 %v1848_v31 }
  0x12   :  { %1683 = vmatmul.mubr.msk.f32.vlgmr.msra.gmra.mrb[0].mxu0 %vm46_vm0, %v24_v11  ;;  %1853 = vmatprep.subr.bf16.mxu1 %v1852_v34 }
  0x13   :  { %1685 = vmatprep.mubr.msk.f32.mxu0 %vm46_vm0, %v25_v12 }
  0x15   :  { %1855 = vmatpush3.bf16.msra.mxu1 %v1852_v34 }
  0x16   :  { %1686 = vmatmul.mubr.msk.f32.gmra.mrb[2].mxu0 %vm46_vm0, %v26_v13  ;;  %1857 = vmatprep.subr.bf16.mxu1 %v1856_v37 }
  0x17   :  { %1688 = vmatprep.mubr.msk.f32.mxu0 %vm46_vm0, %v27_v14 }
  0x19   :  { %1859 = vmatpush3.bf16.msra.mxu1 %v1856_v37 }
  0x1a   :  { %1689 = vmatmul.mubr.msk.f32.gmra.mrb[4].mxu0 %vm46_vm0, %v28_v15  ;;  %1861 = vmatprep.subr.bf16.mxu1 %v1860_v40 }
  0x1b   :  { %1691 = vmatprep.mubr.msk.f32.mxu0 %vm46_vm0, %v29_v16 }
  0x1d   :  { %1863 = vmatpush3.bf16.msra.mxu1 %v1860_v40 }
  0x1e   :  { %1692 = vmatmul.mubr.msk.f32.gmra.mrb[6].mxu0 %vm46_vm0, %v30_v17  ;;  %1865 = vmatprep.subr.bf16.mxu1 %v1864_v43 }
  0x1f   :  { %1694 = vmatprep.mubr.msk.f32.mxu0 %vm46_vm0, %v31_v18 }
  0x21   :  { %1867 = vmatpush3.bf16.msra.mxu1 %v1864_v43 }
  0x22   :  { %1695 = vmatmul.mubr.msk.f32.gmra.mrb[8].mxu0 %vm46_vm0, %v32_v19  ;;  %1730 = vmatprep.subr.msk.mxu1 %vm452_vm2, %v403_v44 }
  0x23   :  { %1697 = vmatprep.mubr.msk.f32.mxu0 %vm46_vm0, %v33_v20 }
  0x25   :  { %1731 = vmatpush3.msk.msra.mxu1 %vm452_vm2, %v403_v44 }
  0x26   :  { %1698 = vmatmul.mubr.msk.f32.gmra.mrb[10].mxu0 %vm46_vm0, %v34_v21 }
  0x27   :  { %1700 = vmatprep.mubr.msk.f32.mxu0 %vm46_vm0, %v35_v22 }
  0x2a   :  { %1701 = vmatmul.mubr.msk.f32.gmra.mrb[12].mxu0 %vm46_vm0, %v36_v23 }
  0x2b   :  { %1703 = vmatprep.mubr.msk.f32.mxu0 %vm46_vm0, %v37_v24 }
  0x2e   :  { %1704 = vmatmul.mubr.msk.f32.gmra.mrb[14].mxu0 %vm46_vm0, %v38_v25 }
  0xe5   :  { %v2131_v45 = vpop.f32.mrb[0].mxu0 }
  0xe6   :  { %v246_v46 = vsel %vm244_vm3, %v2131_v45, 0.0  ;;  %v285_v47 = vmul.f32 %v2131_v45, %v2131_v45  ;;  %v2137_v48 = vpop.f32.mrb[1].mxu0 }
  0xe7   :  { %v245_v49 = vsel %vm244_vm3, %v2137_v48, 0.0  ;;  %v284_v50 = vmul.f32 %v2137_v48, %v2137_v48 }
  0xe8   :  { %v301_v51 = vsel %vm244_vm3, %v285_v47, 0.0  ;;  %v247_v52 = vadd.f32 %v246_v46, %v245_v49 }
  0xe9   :  { %v300_v53 = vsel %vm244_vm3, %v284_v50, 0.0  ;;  %v2145_v54 = vpop.f32.mrb[2].mxu0 }
  0xea   :  { %v302_v55 = vadd.f32 %v301_v51, %v300_v53  ;;  %v2147_v56 = vpop.f32.mrb[3].mxu0  ;;  %v287_v57 = vmul.f32 %v2145_v54, %v2145_v54  ;;  %v250_v61 = vsel %vm244_vm3, %v2145_v54, 0.0 }
  0xeb   :  { %v248_v58 = vsel %vm244_vm3, %v2147_v56, 0.0  ;;  %v286_v59 = vmul.f32 %v2147_v56, %v2147_v56 }
  0xec   :  { %v249_v60 = vadd.f32 %v248_v58, %v247_v52  ;;  %v305_v3 = vsel %vm244_vm3, %v287_v57, 0.0 }
  0xed   :  { %v303_v62 = vsel %vm244_vm3, %v286_v59, 0.0  ;;  %v2158_v63 = vpop.f32.mrb[4].mxu0 }
  0xee   :  { %v304_v0 = vadd.f32 %v303_v62, %v302_v55  ;;  %v2160_v1 = vpop.f32.mrb[5].mxu0  ;;  %v251_v2 = vadd.f32 %v250_v61, %v249_v60  ;;  %v289_v4 = vmul.f32 %v2158_v63, %v2158_v63  ;;  %v254_v9 = vsel %vm244_vm3, %v2158_v63, 0.0 }
  0xef   :  { %v252_v5 = vsel %vm244_vm3, %v2160_v1, 0.0  ;;  %v288_v6 = vmul.f32 %v2160_v1, %v2160_v1 }
  0xf0   :  { %v253_v7 = vadd.f32 %v252_v5, %v251_v2  ;;  %v306_v8 = vadd.f32 %v305_v3, %v304_v0  ;;  %v309_v15 = vsel %vm244_vm3, %v289_v4, 0.0 }
  0xf1   :  { %v307_v10 = vsel %vm244_vm3, %v288_v6, 0.0  ;;  %v2172_v11 = vpop.f32.mrb[6].mxu0 }
  0xf2   :  { %v308_v12 = vadd.f32 %v307_v10, %v306_v8  ;;  %v2174_v13 = vpop.f32.mrb[7].mxu0  ;;  %v255_v14 = vadd.f32 %v254_v9, %v253_v7  ;;  %v291_v16 = vmul.f32 %v2172_v11, %v2172_v11  ;;  %v258_v21 = vsel %vm244_vm3, %v2172_v11, 0.0 }
  0xf3   :  { %v256_v17 = vsel %vm244_vm3, %v2174_v13, 0.0  ;;  %v290_v18 = vmul.f32 %v2174_v13, %v2174_v13 }
  0xf4   :  { %v257_v19 = vadd.f32 %v256_v17, %v255_v14  ;;  %v310_v20 = vadd.f32 %v309_v15, %v308_v12  ;;  %v313_v27 = vsel %vm244_vm3, %v291_v16, 0.0 }
  0xf5   :  { %v311_v22 = vsel %vm244_vm3, %v290_v18, 0.0  ;;  %v2186_v23 = vpop.f32.mrb[8].mxu0 }
  0xf6   :  { %v312_v24 = vadd.f32 %v311_v22, %v310_v20  ;;  %v2188_v25 = vpop.f32.mrb[9].mxu0  ;;  %v259_v26 = vadd.f32 %v258_v21, %v257_v19  ;;  %v293_v28 = vmul.f32 %v2186_v23, %v2186_v23  ;;  %v262_v33 = vsel %vm244_vm3, %v2186_v23, 0.0 }
  0xf7   :  { %v260_v29 = vsel %vm244_vm3, %v2188_v25, 0.0  ;;  %v292_v30 = vmul.f32 %v2188_v25, %v2188_v25 }
  0xf8   :  { %v261_v31 = vadd.f32 %v260_v29, %v259_v26  ;;  %v314_v32 = vadd.f32 %v313_v27, %v312_v24  ;;  %v317_v39 = vsel %vm244_vm3, %v293_v28, 0.0 }
  0xf9   :  { %v315_v34 = vsel %vm244_vm3, %v292_v30, 0.0  ;;  %v2200_v35 = vpop.f32.mrb[10].mxu0 }
  0xfa   :  { %v316_v36 = vadd.f32 %v315_v34, %v314_v32  ;;  %v2202_v37 = vpop.f32.mrb[11].mxu0  ;;  %v263_v38 = vadd.f32 %v262_v33, %v261_v31  ;;  %v295_v40 = vmul.f32 %v2200_v35, %v2200_v35  ;;  %v266_v46 = vsel %vm244_vm3, %v2200_v35, 0.0 }
  0xfb   :  { %v264_v41 = vsel %vm244_vm3, %v2202_v37, 0.0  ;;  %v294_v42 = vmul.f32 %v2202_v37, %v2202_v37 }
  0xfc   :  { %v265_v43 = vadd.f32 %v264_v41, %v263_v38  ;;  %v318_v44 = vadd.f32 %v317_v39, %v316_v36  ;;  %v321_v53 = vsel %vm244_vm3, %v295_v40, 0.0 }
  0xfd   :  { %v319_v47 = vsel %vm244_vm3, %v294_v42, 0.0  ;;  %v2214_v49 = vpop.f32.mrb[12].mxu0 }
  0xfe   :  { %v320_v50 = vadd.f32 %v319_v47, %v318_v44  ;;  %v2216_v51 = vpop.f32.mrb[13].mxu0  ;;  %v267_v52 = vadd.f32 %v266_v46, %v265_v43  ;;  %v297_v55 = vmul.f32 %v2214_v49, %v2214_v49  ;;  %v270_v61 = vsel %vm244_vm3, %v2214_v49, 0.0 }
  0xff   :  { %v268_v57 = vsel %vm244_vm3, %v2216_v51, 0.0  ;;  %v296_v58 = vmul.f32 %v2216_v51, %v2216_v51 }
 0x100   :  { %v269_v59 = vadd.f32 %v268_v57, %v267_v52  ;;  %v322_v60 = vadd.f32 %v321_v53, %v320_v50  ;;  %v325_v5 = vsel %vm244_vm3, %v297_v55, 0.0 }
 0x101   :  { %v323_v62 = vsel %vm244_vm3, %v296_v58, 0.0  ;;  %v2228_v0 = vpop.f32.mrb[14].mxu0 }
 0x102   :  { %v324_v2 = vadd.f32 %v323_v62, %v322_v60  ;;  %v235_v3 = vpop.f32.mrb[15].mxu0  ;;  %v271_v4 = vadd.f32 %v270_v61, %v269_v59  ;;  %v299_v6 = vmul.f32 %v2228_v0, %v2228_v0  ;;  %v274_v12 = vsel %vm244_vm3, %v2228_v0, 0.0 }
 0x103   :  { %v272_v7 = vsel %vm244_vm3, %v235_v3, 0.0  ;;  %v298_v8 = vmul.f32 %v235_v3, %v235_v3 }
 0x104   :  { %v273_v9 = vadd.f32 %v272_v7, %v271_v4  ;;  %v326_v10 = vadd.f32 %v325_v5, %v324_v2  ;;  %v329_v17 = vsel %vm244_vm3, %v299_v6, 0.0 }
 0x105   :  { %v327_v14 = vsel %vm244_vm3, %v298_v8, 0.0 }
 0x106   :  { %v275_v15 = vadd.f32 %v274_v12, %v273_v9  ;;  %v328_v16 = vadd.f32 %v327_v14, %v326_v10 }
 0x108   :  { %v276_v18 = vrot.slane %v275_v15, 4  ;;  %v330_v19 = vadd.f32 %v329_v17, %v328_v16 }
 0x10a   :  { %v277_v20 = vadd.f32 %v276_v18, %v275_v15  ;;  %v331_v21 = vrot.slane %v330_v19, 4 }
 0x10c   :  { %v278_v22 = vrot.slane %v277_v20, 2  ;;  %v332_v24 = vadd.f32 %v331_v21, %v330_v19 }
 0x10e   :  { %v279_v26 = vadd.f32 %v278_v22, %v277_v20  ;;  %v333_v27 = vrot.slane %v332_v24, 2  ;;  %v746_v22 = vld [vmem:[%s2823_s3] sm:$0xff] }
 0x110   :  { %v280_v28 = vrot.slane %v279_v26, 1  ;;  %v334_v29 = vadd.f32 %v333_v27, %v332_v24  ;;  %v747_v24 = vld [vmem:[%s2823_s3 + $0x8] sm:$0xff]  ;;  %v748_v27 = vld [vmem:[%s2823_s3 + $0x10] sm:$0xff] }
 0x112   :  { %v281_v30 = vadd.f32 %v280_v28, %v279_v26  ;;  %v335_v31 = vrot.slane %v334_v29, 1  ;;  %v1868_v26 = vpack.c.bf16 %v747_v24, %v746_v22  ;;  %v749_v28 = vld [vmem:[%s2823_s3 + $0x18] sm:$0xff] }
 0x114   :  { %v283_v32 = vmul.f32 0.0078125, %v281_v30  ;;  %v336_v33 = vadd.f32 %v335_v31, %v334_v29  ;;  %1869 = vmatprep.subr.bf16.mxu0 %v1868_v26  ;;  %v1872_v29 = vpack.c.bf16 %v749_v28, %v748_v27  ;;  %v750_v30 = vld [vmem:[%s2823_s3 + $0x20] sm:$0xff]  ;;  %v751_v31 = vld [vmem:[%s2823_s3 + $0x28] sm:$0xff] }
 0x115   :  { %1871 = vmatpush3.bf16.msra.mxu0 %v1868_v26 }
 0x116   :  { %v337_v34 = vmul.f32 0.0078125, %v336_v33  ;;  %v338_v36 = vmul.f32 %v283_v32, %v283_v32  ;;  %v355_v38 = vsub.f32 %v235_v3, %v283_v32  ;;  %v341_v39 = vsub.f32 %v2137_v48, %v283_v32  ;;  %1873 = vmatprep.subr.bf16.mxu0 %v1872_v29  ;;  %v752_v33 = vld [vmem:[%s2823_s3 + $0x30] sm:$0x3] }
 0x117   :  { %v342_v40 = vsub.f32 %v2131_v45, %v283_v32  ;;  %v343_v41 = vsub.f32 %v2147_v56, %v283_v32  ;;  %v344_v42 = vsub.f32 %v2145_v54, %v283_v32  ;;  %v345_v43 = vsub.f32 %v2160_v1, %v283_v32 }
 0x118   :  { %v339_v44 = vsub.f32 %v337_v34, %v338_v36  ;;  %v346_v46 = vsub.f32 %v2158_v63, %v283_v32  ;;  %v347_v47 = vsub.f32 %v2174_v13, %v283_v32  ;;  %v348_v50 = vsub.f32 %v2172_v11, %v283_v32 }
 0x119   :  { %v349_v52 = vsub.f32 %v2188_v25, %v283_v32  ;;  %v350_v53 = vsub.f32 %v2186_v23, %v283_v32  ;;  %v351_v48 = vsub.f32 %v2202_v37, %v283_v32  ;;  %v352_v45 = vsub.f32 %v2200_v35, %v283_v32  ;;  %1875 = vmatpush3.bf16.msra.mxu0 %v1872_v29 }
 0x11a   :  { %v340_v56 = vmax.f32 %v339_v44, 0.0  ;;  %v353_v54 = vsub.f32 %v2216_v51, %v283_v32  ;;  %v354_v1 = vsub.f32 %v2214_v49, %v283_v32  ;;  %v356_v55 = vsub.f32 %v2228_v0, %v283_v32 }
 0x11b   :  { %v1876_v32 = vpack.c.bf16 %v751_v31, %v750_v30 }
 0x11c   :  { %v357_v63 = vadd.f32 1e-05, %v340_v56 }
 0x11d   :  { %1877 = vmatprep.subr.bf16.mxu0 %v1876_v32 }
 0x11e   :  { %1900 = vrsqrt.f32 %v357_v63  ;;  %1879 = vmatpush3.bf16.msra.mxu0 %v1876_v32 }
 0x11f   :  { %1768 = vmatprep.subr.msk.mxu0 %vm95_vm1, %v752_v33 }
 0x122   :  { %1769 = vmatpush3.msk.msra.mxu0 %vm95_vm1, %v752_v33 }
 0x128   :  { %v1901_v13 = vpop.eup %1900 }
 0x129   :  { %v373_v57 = vmul.f32 %v1901_v13, %v355_v38  ;;  %v359_v11 = vmul.f32 %v1901_v13, %v341_v39  ;;  %v360_v58 = vmul.f32 %v1901_v13, %v342_v40  ;;  %v361_v25 = vmul.f32 %v1901_v13, %v343_v41 }
 0x12a   :  { %v362_v59 = vmul.f32 %v1901_v13, %v344_v42  ;;  %v363_v23 = vmul.f32 %v1901_v13, %v345_v43  ;;  %v364_v60 = vmul.f32 %v1901_v13, %v346_v46  ;;  %v365_v37 = vmul.f32 %v1901_v13, %v347_v47 }
 0x12b   :  { %v375_v61 = vmax.f32 %v359_v11, 0.0  ;;  %v376_v35 = vmax.f32 %v360_v58, 0.0  ;;  %v377_v62 = vmax.f32 %v361_v25, 0.0  ;;  %v366_v51 = vmul.f32 %v1901_v13, %v348_v50 }
 0x12c   :  { %v367_v49 = vmul.f32 %v1901_v13, %v349_v52  ;;  %v368_v2 = vmul.f32 %v1901_v13, %v350_v53  ;;  %v369_v0 = vmul.f32 %v1901_v13, %v351_v48  ;;  %v370_v3 = vmul.f32 %v1901_v13, %v352_v45 }
 0x12d   :  { %1732 = vmatprep.mubr.msk.f32.mxu1 %vm244_vm3, %v375_v61  ;;  %v371_v4 = vmul.f32 %v1901_v13, %v353_v54  ;;  %v372_v5 = vmul.f32 %v1901_v13, %v354_v1  ;;  %v374_v6 = vmul.f32 %v1901_v13, %v356_v55  ;;  %v378_v7 = vmax.f32 %v362_v59, 0.0 }
 0x12e   :  { %1733 = vmatmul.mubr.msk.f32.vlgmr.msra.gmra.mrb[0].mxu1 %vm244_vm3, %v376_v35  ;;  %v379_v8 = vmax.f32 %v363_v23, 0.0  ;;  %v380_v9 = vmax.f32 %v364_v60, 0.0  ;;  %v381_v10 = vmax.f32 %v365_v37, 0.0  ;;  %v382_v12 = vmax.f32 %v366_v51, 0.0 }
 0x12f   :  { %1735 = vmatprep.mubr.msk.f32.mxu1 %vm244_vm3, %v377_v62  ;;  %v383_v14 = vmax.f32 %v367_v49, 0.0  ;;  %v384_v15 = vmax.f32 %v368_v2, 0.0  ;;  %v385_v16 = vmax.f32 %v369_v0, 0.0  ;;  %v386_v17 = vmax.f32 %v370_v3, 0.0 }
 0x130   :  { %v387_v18 = vmax.f32 %v371_v4, 0.0  ;;  %v388_v19 = vmax.f32 %v372_v5, 0.0  ;;  %v389_v20 = vmax.f32 %v373_v57, 0.0  ;;  %v390_v21 = vmax.f32 %v374_v6, 0.0 }
 0x132   :  { %1736 = vmatmul.mubr.msk.f32.gmra.mrb[2].mxu1 %vm244_vm3, %v378_v7 }
 0x133   :  { %1738 = vmatprep.mubr.msk.f32.mxu1 %vm244_vm3, %v379_v8 }
 0x136   :  { %1739 = vmatmul.mubr.msk.f32.gmra.mrb[4].mxu1 %vm244_vm3, %v380_v9 }
 0x137   :  { %1741 = vmatprep.mubr.msk.f32.mxu1 %vm244_vm3, %v381_v10 }
 0x13a   :  { %1742 = vmatmul.mubr.msk.f32.gmra.mrb[6].mxu1 %vm244_vm3, %v382_v12 }
 0x13b   :  { %1744 = vmatprep.mubr.msk.f32.mxu1 %vm244_vm3, %v383_v14 }
 0x13e   :  { %1745 = vmatmul.mubr.msk.f32.gmra.mrb[8].mxu1 %vm244_vm3, %v384_v15 }
 0x13f   :  { %1747 = vmatprep.mubr.msk.f32.mxu1 %vm244_vm3, %v385_v16 }
 0x142   :  { %1748 = vmatmul.mubr.msk.f32.gmra.mrb[10].mxu1 %vm244_vm3, %v386_v17 }
 0x143   :  { %1750 = vmatprep.mubr.msk.f32.mxu1 %vm244_vm3, %v387_v18 }
 0x146   :  { %1751 = vmatmul.mubr.msk.f32.gmra.mrb[12].mxu1 %vm244_vm3, %v388_v19 }
 0x147   :  { %1753 = vmatprep.mubr.msk.f32.mxu1 %vm244_vm3, %v389_v20 }
 0x14a   :  { %1754 = vmatmul.mubr.msk.f32.gmra.mrb[14].mxu1 %vm244_vm3, %v390_v21 }
 0x201   :  { %v2292_v34 = vpop.f32.mrb[0].mxu1 }
 0x202   :  { %v602_v36 = vsel %vm46_vm0, %v2292_v34, 0.0  ;;  %v640_v38 = vmul.f32 %v2292_v34, %v2292_v34  ;;  %v2298_v39 = vpop.f32.mrb[1].mxu1 }
 0x203   :  { %v601_v40 = vsel %vm46_vm0, %v2298_v39, 0.0  ;;  %v639_v41 = vmul.f32 %v2298_v39, %v2298_v39 }
 0x204   :  { %v656_v42 = vsel %vm46_vm0, %v640_v38, 0.0  ;;  %v603_v43 = vadd.f32 %v602_v36, %v601_v40 }
 0x205   :  { %v655_v44 = vsel %vm46_vm0, %v639_v41, 0.0  ;;  %v2306_v46 = vpop.f32.mrb[2].mxu1 }
 0x206   :  { %v657_v47 = vadd.f32 %v656_v42, %v655_v44  ;;  %v2308_v50 = vpop.f32.mrb[3].mxu1  ;;  %v642_v52 = vmul.f32 %v2306_v46, %v2306_v46  ;;  %v606_v56 = vsel %vm46_vm0, %v2306_v46, 0.0 }
 0x207   :  { %v604_v53 = vsel %vm46_vm0, %v2308_v50, 0.0  ;;  %v641_v48 = vmul.f32 %v2308_v50, %v2308_v50 }
 0x208   :  { %v605_v45 = vadd.f32 %v604_v53, %v603_v43  ;;  %v660_v57 = vsel %vm46_vm0, %v642_v52, 0.0 }
 0x209   :  { %v658_v54 = vsel %vm46_vm0, %v641_v48, 0.0  ;;  %v2319_v1 = vpop.f32.mrb[4].mxu1 }
 0x20a   :  { %v659_v55 = vadd.f32 %v658_v54, %v657_v47  ;;  %v2321_v63 = vpop.f32.mrb[5].mxu1  ;;  %v607_v13 = vadd.f32 %v606_v56, %v605_v45  ;;  %v644_v11 = vmul.f32 %v2319_v1, %v2319_v1  ;;  %v610_v60 = vsel %vm46_vm0, %v2319_v1, 0.0 }
 0x20b   :  { %v608_v58 = vsel %vm46_vm0, %v2321_v63, 0.0  ;;  %v643_v25 = vmul.f32 %v2321_v63, %v2321_v63 }
 0x20c   :  { %v609_v59 = vadd.f32 %v608_v58, %v607_v13  ;;  %v661_v23 = vadd.f32 %v660_v57, %v659_v55  ;;  %v664_v49 = vsel %vm46_vm0, %v644_v11, 0.0 }
 0x20d   :  { %v662_v37 = vsel %vm46_vm0, %v643_v25, 0.0  ;;  %v2333_v61 = vpop.f32.mrb[6].mxu1 }
 0x20e   :  { %v663_v35 = vadd.f32 %v662_v37, %v661_v23  ;;  %v2335_v62 = vpop.f32.mrb[7].mxu1  ;;  %v611_v51 = vadd.f32 %v610_v60, %v609_v59  ;;  %v646_v2 = vmul.f32 %v2333_v61, %v2333_v61  ;;  %v614_v6 = vsel %vm46_vm0, %v2333_v61, 0.0 }
 0x20f   :  { %v612_v0 = vsel %vm46_vm0, %v2335_v62, 0.0  ;;  %v645_v3 = vmul.f32 %v2335_v62, %v2335_v62 }
 0x210   :  { %v613_v4 = vadd.f32 %v612_v0, %v611_v51  ;;  %v665_v5 = vadd.f32 %v664_v49, %v663_v35  ;;  %v668_v14 = vsel %vm46_vm0, %v646_v2, 0.0 }
 0x211   :  { %v666_v7 = vsel %vm46_vm0, %v645_v3, 0.0  ;;  %v2347_v8 = vpop.f32.mrb[8].mxu1 }
 0x212   :  { %v667_v9 = vadd.f32 %v666_v7, %v665_v5  ;;  %v2349_v10 = vpop.f32.mrb[9].mxu1  ;;  %v615_v12 = vadd.f32 %v614_v6, %v613_v4  ;;  %v648_v15 = vmul.f32 %v2347_v8, %v2347_v8  ;;  %v618_v20 = vsel %vm46_vm0, %v2347_v8, 0.0 }
 0x213   :  { %v616_v16 = vsel %vm46_vm0, %v2349_v10, 0.0  ;;  %v647_v17 = vmul.f32 %v2349_v10, %v2349_v10 }
 0x214   :  { %v617_v18 = vadd.f32 %v616_v16, %v615_v12  ;;  %v669_v19 = vadd.f32 %v668_v14, %v667_v9  ;;  %v672_v28 = vsel %vm46_vm0, %v648_v15, 0.0 }
 0x215   :  { %v670_v21 = vsel %vm46_vm0, %v647_v17, 0.0  ;;  %v2361_v22 = vpop.f32.mrb[10].mxu1 }
 0x216   :  { %v671_v24 = vadd.f32 %v670_v21, %v669_v19  ;;  %v2363_v26 = vpop.f32.mrb[11].mxu1  ;;  %v619_v27 = vadd.f32 %v618_v20, %v617_v18  ;;  %v650_v29 = vmul.f32 %v2361_v22, %v2361_v22  ;;  %v622_v36 = vsel %vm46_vm0, %v2361_v22, 0.0 }
 0x217   :  { %v620_v30 = vsel %vm46_vm0, %v2363_v26, 0.0  ;;  %v649_v31 = vmul.f32 %v2363_v26, %v2363_v26 }
 0x218   :  { %v621_v32 = vadd.f32 %v620_v30, %v619_v27  ;;  %v673_v33 = vadd.f32 %v672_v28, %v671_v24  ;;  %v676_v44 = vsel %vm46_vm0, %v650_v29, 0.0 }
 0x219   :  { %v674_v38 = vsel %vm46_vm0, %v649_v31, 0.0  ;;  %v2375_v40 = vpop.f32.mrb[12].mxu1 }
 0x21a   :  { %v675_v41 = vadd.f32 %v674_v38, %v673_v33  ;;  %v2377_v42 = vpop.f32.mrb[13].mxu1  ;;  %v623_v43 = vadd.f32 %v622_v36, %v621_v32  ;;  %v652_v47 = vmul.f32 %v2375_v40, %v2375_v40  ;;  %v626_v56 = vsel %vm46_vm0, %v2375_v40, 0.0 }
 0x21b   :  { %v624_v52 = vsel %vm46_vm0, %v2377_v42, 0.0  ;;  %v651_v53 = vmul.f32 %v2377_v42, %v2377_v42 }
 0x21c   :  { %v625_v48 = vadd.f32 %v624_v52, %v623_v43  ;;  %v677_v45 = vadd.f32 %v676_v44, %v675_v41  ;;  %v680_v58 = vsel %vm46_vm0, %v652_v47, 0.0 }
 0x21d   :  { %v678_v54 = vsel %vm46_vm0, %v651_v53, 0.0  ;;  %v2389_v55 = vpop.f32.mrb[14].mxu1 }
 0x21e   :  { %v679_v13 = vadd.f32 %v678_v54, %v677_v45  ;;  %v592_v57 = vpop.f32.mrb[15].mxu1  ;;  %v627_v11 = vadd.f32 %v626_v56, %v625_v48  ;;  %v654_v25 = vmul.f32 %v2389_v55, %v2389_v55  ;;  %v630_v35 = vsel %vm46_vm0, %v2389_v55, 0.0 }
 0x21f   :  { %v628_v59 = vsel %vm46_vm0, %v592_v57, 0.0  ;;  %v653_v23 = vmul.f32 %v592_v57, %v592_v57 }
 0x220   :  { %v629_v60 = vadd.f32 %v628_v59, %v627_v11  ;;  %v681_v37 = vadd.f32 %v680_v58, %v679_v13  ;;  %v684_v0 = vsel %vm46_vm0, %v654_v25, 0.0 }
 0x221   :  { %v682_v51 = vsel %vm46_vm0, %v653_v23, 0.0 }
 0x222   :  { %v631_v49 = vadd.f32 %v630_v35, %v629_v60  ;;  %v683_v2 = vadd.f32 %v682_v51, %v681_v37 }
 0x224   :  { %v632_v3 = vrot.slane %v631_v49, 4  ;;  %v685_v4 = vadd.f32 %v684_v0, %v683_v2 }
 0x226   :  { %v633_v5 = vadd.f32 %v632_v3, %v631_v49  ;;  %v686_v6 = vrot.slane %v685_v4, 4 }
 0x228   :  { %v634_v7 = vrot.slane %v633_v5, 2  ;;  %v687_v9 = vadd.f32 %v686_v6, %v685_v4 }
 0x22a   :  { %v635_v12 = vadd.f32 %v634_v7, %v633_v5  ;;  %v688_v14 = vrot.slane %v687_v9, 2  ;;  %v1094_v7 = vld [vmem:[%s2824_s4] sm:$0xff] }
 0x22c   :  { %v636_v15 = vrot.slane %v635_v12, 1  ;;  %v689_v16 = vadd.f32 %v688_v14, %v687_v9  ;;  %v1095_v9 = vld [vmem:[%s2824_s4 + $0x8] sm:$0xff]  ;;  %v1096_v14 = vld [vmem:[%s2824_s4 + $0x10] sm:$0xff] }
 0x22e   :  { %v637_v17 = vadd.f32 %v636_v15, %v635_v12  ;;  %v690_v18 = vrot.slane %v689_v16, 1  ;;  %v1880_v12 = vpack.c.bf16 %v1095_v9, %v1094_v7  ;;  %v1097_v15 = vld [vmem:[%s2824_s4 + $0x18] sm:$0xff] }
 0x230   :  { %v638_v19 = vmul.f32 0.0078125, %v637_v17  ;;  %v691_v20 = vadd.f32 %v690_v18, %v689_v16  ;;  %1881 = vmatprep.subr.bf16.mxu0 %v1880_v12  ;;  %1892 = vmatprep.subr.bf16.mxu1 %v1880_v12  ;;  %v1884_v16 = vpack.c.bf16 %v1097_v15, %v1096_v14  ;;  %v1098_v17 = vld [vmem:[%s2824_s4 + $0x20] sm:$0xff]  ;;  %v1099_v18 = vld [vmem:[%s2824_s4 + $0x28] sm:$0xff] }
 0x231   :  { %1896 = vmatpush3.bf16.msra.mxu1 %v1880_v12 }
 0x232   :  { %v692_v21 = vmul.f32 0.0078125, %v691_v20  ;;  %v693_v24 = vmul.f32 %v638_v19, %v638_v19  ;;  %v710_v27 = vsub.f32 %v592_v57, %v638_v19  ;;  %v696_v28 = vsub.f32 %v2298_v39, %v638_v19  ;;  %1893 = vmatprep.subr.bf16.mxu1 %v1884_v16  ;;  %v1100_v20 = vld [vmem:[%s2824_s4 + $0x30] sm:$0x3] }
 0x233   :  { %v697_v29 = vsub.f32 %v2292_v34, %v638_v19  ;;  %v698_v30 = vsub.f32 %v2308_v50, %v638_v19  ;;  %v699_v31 = vsub.f32 %v2306_v46, %v638_v19  ;;  %v700_v32 = vsub.f32 %v2321_v63, %v638_v19 }
 0x234   :  { %v694_v33 = vsub.f32 %v692_v21, %v693_v24  ;;  %v701_v36 = vsub.f32 %v2319_v1, %v638_v19  ;;  %v702_v38 = vsub.f32 %v2335_v62, %v638_v19  ;;  %v703_v41 = vsub.f32 %v2333_v61, %v638_v19 }
 0x235   :  { %v704_v43 = vsub.f32 %v2349_v10, %v638_v19  ;;  %v705_v44 = vsub.f32 %v2347_v8, %v638_v19  ;;  %v706_v39 = vsub.f32 %v2363_v26, %v638_v19  ;;  %v707_v34 = vsub.f32 %v2361_v22, %v638_v19  ;;  %1897 = vmatpush3.bf16.msra.mxu1 %v1884_v16 }
 0x236   :  { %v695_v50 = vmax.f32 %v694_v33, 0.0  ;;  %v708_v46 = vsub.f32 %v2377_v42, %v638_v19  ;;  %v709_v63 = vsub.f32 %v2375_v40, %v638_v19  ;;  %v711_v47 = vsub.f32 %v2389_v55, %v638_v19 }
 0x237   :  { %v1888_v19 = vpack.c.bf16 %v1099_v18, %v1098_v17 }
 0x238   :  { %v712_v1 = vadd.f32 1e-05, %v695_v50 }
 0x239   :  { %1894 = vmatprep.subr.bf16.mxu1 %v1888_v19 }
 0x23a   :  { %1902 = vrsqrt.f32 %v712_v1  ;;  %1898 = vmatpush3.bf16.msra.mxu1 %v1888_v19 }
 0x23b   :  { %1895 = vmatprep.subr.msk.mxu1 %vm95_vm1, %v1100_v20 }
 0x23e   :  { %1899 = vmatpush3.msk.msra.mxu1 %vm95_vm1, %v1100_v20 }
 0x244   :  { %v1903_v62 = vpop.eup %1902 }
 0x245   :  { %v728_v52 = vmul.f32 %v1903_v62, %v710_v27  ;;  %v714_v61 = vmul.f32 %v1903_v62, %v696_v28  ;;  %v715_v53 = vmul.f32 %v1903_v62, %v697_v29  ;;  %v716_v10 = vmul.f32 %v1903_v62, %v698_v30 }
 0x246   :  { %v717_v48 = vmul.f32 %v1903_v62, %v699_v31  ;;  %v718_v8 = vmul.f32 %v1903_v62, %v700_v32  ;;  %v719_v45 = vmul.f32 %v1903_v62, %v701_v36  ;;  %v720_v26 = vmul.f32 %v1903_v62, %v702_v38 }
 0x247   :  { %v730_v56 = vmax.f32 %v714_v61, 0.0  ;;  %v731_v22 = vmax.f32 %v715_v53, 0.0  ;;  %v732_v54 = vmax.f32 %v716_v10, 0.0  ;;  %v721_v42 = vmul.f32 %v1903_v62, %v703_v41 }
 0x248   :  { %v722_v40 = vmul.f32 %v1903_v62, %v704_v43  ;;  %v723_v13 = vmul.f32 %v1903_v62, %v705_v44  ;;  %v724_v55 = vmul.f32 %v1903_v62, %v706_v39  ;;  %v725_v57 = vmul.f32 %v1903_v62, %v707_v34 }
 0x249   :  { %1770 = vmatprep.mubr.msk.f32.mxu0 %vm46_vm0, %v730_v56  ;;  %v726_v11 = vmul.f32 %v1903_v62, %v708_v46  ;;  %v727_v58 = vmul.f32 %v1903_v62, %v709_v63  ;;  %v729_v25 = vmul.f32 %v1903_v62, %v711_v47  ;;  %v733_v59 = vmax.f32 %v717_v48, 0.0 }
 0x24a   :  { %1771 = vmatmul.mubr.msk.f32.vlgmr.msra.gmra.mrb[16].mxu0 %vm46_vm0, %v731_v22  ;;  %v734_v23 = vmax.f32 %v718_v8, 0.0  ;;  %v735_v60 = vmax.f32 %v719_v45, 0.0  ;;  %v736_v37 = vmax.f32 %v720_v26, 0.0  ;;  %v737_v35 = vmax.f32 %v721_v42, 0.0 }
 0x24b   :  { %1773 = vmatprep.mubr.msk.f32.mxu0 %vm46_vm0, %v732_v54  ;;  %v738_v51 = vmax.f32 %v722_v40, 0.0  ;;  %v739_v49 = vmax.f32 %v723_v13, 0.0  ;;  %v740_v2 = vmax.f32 %v724_v55, 0.0  ;;  %v741_v0 = vmax.f32 %v725_v57, 0.0  ;;  %1883 = vmatpush3.bf16.msra.mxu0 %v1880_v12 }
 0x24c   :  { %v742_v3 = vmax.f32 %v726_v11, 0.0  ;;  %v743_v4 = vmax.f32 %v727_v58, 0.0  ;;  %v744_v5 = vmax.f32 %v728_v52, 0.0  ;;  %v745_v6 = vmax.f32 %v729_v25, 0.0  ;;  %1885 = vmatprep.subr.bf16.mxu0 %v1884_v16 }
 0x24e   :  { %1774 = vmatmul.mubr.msk.f32.gmra.mrb[18].mxu0 %vm46_vm0, %v733_v59 }
 0x24f   :  { %1776 = vmatprep.mubr.msk.f32.mxu0 %vm46_vm0, %v734_v23  ;;  %1887 = vmatpush3.bf16.msra.mxu0 %v1884_v16 }
 0x250   :  { %1889 = vmatprep.subr.bf16.mxu0 %v1888_v19 }
 0x252   :  { %1777 = vmatmul.mubr.msk.f32.gmra.mrb[20].mxu0 %vm46_vm0, %v735_v60 }
 0x253   :  { %1779 = vmatprep.mubr.msk.f32.mxu0 %vm46_vm0, %v736_v37  ;;  %1891 = vmatpush3.bf16.msra.mxu0 %v1888_v19 }
 0x254   :  { %1806 = vmatprep.subr.msk.mxu0 %vm95_vm1, %v1100_v20 }
 0x256   :  { %1780 = vmatmul.mubr.msk.f32.gmra.mrb[22].mxu0 %vm46_vm0, %v737_v35 }
 0x257   :  { %1782 = vmatprep.mubr.msk.f32.mxu0 %vm46_vm0, %v738_v51  ;;  %1807 = vmatpush3.msk.msra.mxu0 %vm95_vm1, %v1100_v20 }
 0x25a   :  { %1783 = vmatmul.mubr.msk.f32.gmra.mrb[24].mxu0 %vm46_vm0, %v739_v49 }
 0x25b   :  { %1785 = vmatprep.mubr.msk.f32.mxu0 %vm46_vm0, %v740_v2 }
 0x25e   :  { %1786 = vmatmul.mubr.msk.f32.gmra.mrb[26].mxu0 %vm46_vm0, %v741_v0 }
 0x25f   :  { %1788 = vmatprep.mubr.msk.f32.mxu0 %vm46_vm0, %v742_v3 }
 0x262   :  { %1789 = vmatmul.mubr.msk.f32.gmra.mrb[28].mxu0 %vm46_vm0, %v743_v4 }
 0x263   :  { %1791 = vmatprep.mubr.msk.f32.mxu0 %vm46_vm0, %v744_v5 }
 0x266   :  { %1792 = vmatmul.mubr.msk.f32.gmra.mrb[30].mxu0 %vm46_vm0, %v745_v6 }
 0x31d   :  { %v2455_v21 = vpop.f32.mrb[16].mxu0 }
 0x31e   :  { %v950_v24 = vsel %vm46_vm0, %v2455_v21, 0.0  ;;  %v988_v27 = vmul.f32 %v2455_v21, %v2455_v21  ;;  %v2461_v28 = vpop.f32.mrb[17].mxu0 }
 0x31f   :  { %v949_v29 = vsel %vm46_vm0, %v2461_v28, 0.0  ;;  %v987_v30 = vmul.f32 %v2461_v28, %v2461_v28 }
 0x320   :  { %v1004_v31 = vsel %vm46_vm0, %v988_v27, 0.0  ;;  %v951_v32 = vadd.f32 %v950_v24, %v949_v29 }
 0x321   :  { %v1003_v33 = vsel %vm46_vm0, %v987_v30, 0.0  ;;  %v2469_v36 = vpop.f32.mrb[18].mxu0 }
 0x322   :  { %v1005_v38 = vadd.f32 %v1004_v31, %v1003_v33  ;;  %v2471_v41 = vpop.f32.mrb[19].mxu0  ;;  %v990_v43 = vmul.f32 %v2469_v36, %v2469_v36  ;;  %v954_v50 = vsel %vm46_vm0, %v2469_v36, 0.0 }
 0x323   :  { %v952_v44 = vsel %vm46_vm0, %v2471_v41, 0.0  ;;  %v989_v39 = vmul.f32 %v2471_v41, %v2471_v41 }
 0x324   :  { %v953_v34 = vadd.f32 %v952_v44, %v951_v32  ;;  %v1008_v52 = vsel %vm46_vm0, %v990_v43, 0.0 }
 0x325   :  { %v1006_v46 = vsel %vm46_vm0, %v989_v39, 0.0  ;;  %v2482_v63 = vpop.f32.mrb[20].mxu0 }
 0x326   :  { %v1007_v47 = vadd.f32 %v1006_v46, %v1005_v38  ;;  %v2484_v1 = vpop.f32.mrb[21].mxu0  ;;  %v955_v62 = vadd.f32 %v954_v50, %v953_v34  ;;  %v992_v61 = vmul.f32 %v2482_v63, %v2482_v63  ;;  %v958_v45 = vsel %vm46_vm0, %v2482_v63, 0.0 }
 0x327   :  { %v956_v53 = vsel %vm46_vm0, %v2484_v1, 0.0  ;;  %v991_v10 = vmul.f32 %v2484_v1, %v2484_v1 }
 0x328   :  { %v957_v48 = vadd.f32 %v956_v53, %v955_v62  ;;  %v1009_v8 = vadd.f32 %v1008_v52, %v1007_v47  ;;  %v1012_v40 = vsel %vm46_vm0, %v992_v61, 0.0 }
 0x329   :  { %v1010_v26 = vsel %vm46_vm0, %v991_v10, 0.0  ;;  %v2496_v56 = vpop.f32.mrb[22].mxu0 }
 0x32a   :  { %v1011_v22 = vadd.f32 %v1010_v26, %v1009_v8  ;;  %v2498_v54 = vpop.f32.mrb[23].mxu0  ;;  %v959_v42 = vadd.f32 %v958_v45, %v957_v48  ;;  %v994_v13 = vmul.f32 %v2496_v56, %v2496_v56  ;;  %v962_v25 = vsel %vm46_vm0, %v2496_v56, 0.0 }
 0x32b   :  { %v960_v55 = vsel %vm46_vm0, %v2498_v54, 0.0  ;;  %v993_v57 = vmul.f32 %v2498_v54, %v2498_v54 }
 0x32c   :  { %v961_v11 = vadd.f32 %v960_v55, %v959_v42  ;;  %v1013_v58 = vadd.f32 %v1012_v40, %v1011_v22  ;;  %v1016_v51 = vsel %vm46_vm0, %v994_v13, 0.0 }
 0x32d   :  { %v1014_v59 = vsel %vm46_vm0, %v993_v57, 0.0  ;;  %v2510_v23 = vpop.f32.mrb[24].mxu0 }
 0x32e   :  { %v1015_v60 = vadd.f32 %v1014_v59, %v1013_v58  ;;  %v2512_v37 = vpop.f32.mrb[25].mxu0  ;;  %v963_v35 = vadd.f32 %v962_v25, %v961_v11  ;;  %v996_v49 = vmul.f32 %v2510_v23, %v2510_v23  ;;  %v966_v5 = vsel %vm46_vm0, %v2510_v23, 0.0 }
 0x32f   :  { %v964_v2 = vsel %vm46_vm0, %v2512_v37, 0.0  ;;  %v995_v0 = vmul.f32 %v2512_v37, %v2512_v37 }
 0x330   :  { %v965_v3 = vadd.f32 %v964_v2, %v963_v35  ;;  %v1017_v4 = vadd.f32 %v1016_v51, %v1015_v60  ;;  %v1020_v15 = vsel %vm46_vm0, %v996_v49, 0.0 }
 0x331   :  { %v1018_v6 = vsel %vm46_vm0, %v995_v0, 0.0  ;;  %v2524_v7 = vpop.f32.mrb[26].mxu0 }
 0x332   :  { %v1019_v9 = vadd.f32 %v1018_v6, %v1017_v4  ;;  %v2526_v12 = vpop.f32.mrb[27].mxu0  ;;  %v967_v14 = vadd.f32 %v966_v5, %v965_v3  ;;  %v998_v16 = vmul.f32 %v2524_v7, %v2524_v7  ;;  %v970_v24 = vsel %vm46_vm0, %v2524_v7, 0.0 }
 0x333   :  { %v968_v17 = vsel %vm46_vm0, %v2526_v12, 0.0  ;;  %v997_v18 = vmul.f32 %v2526_v12, %v2526_v12 }
 0x334   :  { %v969_v19 = vadd.f32 %v968_v17, %v967_v14  ;;  %v1021_v20 = vadd.f32 %v1020_v15, %v1019_v9  ;;  %v1024_v33 = vsel %vm46_vm0, %v998_v16, 0.0 }
 0x335   :  { %v1022_v27 = vsel %vm46_vm0, %v997_v18, 0.0  ;;  %v2538_v29 = vpop.f32.mrb[28].mxu0 }
 0x336   :  { %v1023_v30 = vadd.f32 %v1022_v27, %v1021_v20  ;;  %v2540_v31 = vpop.f32.mrb[29].mxu0  ;;  %v971_v32 = vadd.f32 %v970_v24, %v969_v19  ;;  %v1000_v38 = vmul.f32 %v2538_v29, %v2538_v29  ;;  %v974_v50 = vsel %vm46_vm0, %v2538_v29, 0.0 }
 0x337   :  { %v972_v43 = vsel %vm46_vm0, %v2540_v31, 0.0  ;;  %v999_v44 = vmul.f32 %v2540_v31, %v2540_v31 }
 0x338   :  { %v973_v39 = vadd.f32 %v972_v43, %v971_v32  ;;  %v1025_v34 = vadd.f32 %v1024_v33, %v1023_v30  ;;  %v1028_v53 = vsel %vm46_vm0, %v1000_v38, 0.0 }
 0x339   :  { %v1026_v46 = vsel %vm46_vm0, %v999_v44, 0.0  ;;  %v2552_v47 = vpop.f32.mrb[30].mxu0 }
 0x33a   :  { %v1027_v62 = vadd.f32 %v1026_v46, %v1025_v34  ;;  %v940_v52 = vpop.f32.mrb[31].mxu0  ;;  %v975_v61 = vadd.f32 %v974_v50, %v973_v39  ;;  %v1002_v10 = vmul.f32 %v2552_v47, %v2552_v47  ;;  %v978_v22 = vsel %vm46_vm0, %v2552_v47, 0.0 }
 0x33b   :  { %v976_v48 = vsel %vm46_vm0, %v940_v52, 0.0  ;;  %v1001_v8 = vmul.f32 %v940_v52, %v940_v52 }
 0x33c   :  { %v977_v45 = vadd.f32 %v976_v48, %v975_v61  ;;  %v1029_v26 = vadd.f32 %v1028_v53, %v1027_v62  ;;  %v1032_v55 = vsel %vm46_vm0, %v1002_v10, 0.0 }
 0x33d   :  { %v1030_v42 = vsel %vm46_vm0, %v1001_v8, 0.0 }
 0x33e   :  { %v979_v40 = vadd.f32 %v978_v22, %v977_v45  ;;  %v1031_v13 = vadd.f32 %v1030_v42, %v1029_v26 }
 0x340   :  { %v980_v57 = vrot.slane %v979_v40, 4  ;;  %v1033_v11 = vadd.f32 %v1032_v55, %v1031_v13 }
 0x342   :  { %v981_v58 = vadd.f32 %v980_v57, %v979_v40  ;;  %v1034_v25 = vrot.slane %v1033_v11, 4 }
 0x344   :  { %v982_v59 = vrot.slane %v981_v58, 2  ;;  %v1035_v60 = vadd.f32 %v1034_v25, %v1033_v11 }
 0x346   :  { %v983_v35 = vadd.f32 %v982_v59, %v981_v58  ;;  %v1036_v51 = vrot.slane %v1035_v60, 2  ;;  %v1552_v59 = vld [vmem:[%s2825_s5] ss:$0 sm:$0xff] }
 0x348   :  { %v984_v49 = vrot.slane %v983_v35, 1  ;;  %v1037_v2 = vadd.f32 %v1036_v51, %v1035_v60 }
 0x34a   :  { %v985_v0 = vadd.f32 %v984_v49, %v983_v35  ;;  %v1038_v3 = vrot.slane %v1037_v2, 1 }
 0x34c   :  { %v986_v4 = vmul.f32 0.0078125, %v985_v0  ;;  %v1039_v5 = vadd.f32 %v1038_v3, %v1037_v2 }
 0x34e   :  { %v1040_v6 = vmul.f32 0.0078125, %v1039_v5  ;;  %v1041_v9 = vmul.f32 %v986_v4, %v986_v4  ;;  %v1058_v14 = vsub.f32 %v940_v52, %v986_v4  ;;  %v1044_v15 = vsub.f32 %v2461_v28, %v986_v4 }
 0x34f   :  { %v1046_v16 = vsub.f32 %v2471_v41, %v986_v4  ;;  %v1045_v17 = vsub.f32 %v2455_v21, %v986_v4  ;;  %v1047_v18 = vsub.f32 %v2469_v36, %v986_v4  ;;  %v1048_v19 = vsub.f32 %v2484_v1, %v986_v4 }
 0x350   :  { %v1042_v20 = vsub.f32 %v1040_v6, %v1041_v9  ;;  %v1049_v24 = vsub.f32 %v2482_v63, %v986_v4  ;;  %v1050_v27 = vsub.f32 %v2498_v54, %v986_v4  ;;  %v1051_v30 = vsub.f32 %v2496_v56, %v986_v4 }
 0x351   :  { %v1052_v32 = vsub.f32 %v2512_v37, %v986_v4  ;;  %v1053_v33 = vsub.f32 %v2510_v23, %v986_v4  ;;  %v1054_v28 = vsub.f32 %v2526_v12, %v986_v4  ;;  %v1055_v41 = vsub.f32 %v2524_v7, %v986_v4 }
 0x352   :  { %v1043_v21 = vmax.f32 %v1042_v20, 0.0  ;;  %v1056_v36 = vsub.f32 %v2540_v31, %v986_v4  ;;  %v1057_v1 = vsub.f32 %v2538_v29, %v986_v4  ;;  %v1059_v38 = vsub.f32 %v2552_v47, %v986_v4 }
 0x354   :  { %v1060_v63 = vadd.f32 1e-05, %v1043_v21 }
 0x356   :  { %1904 = vrsqrt.f32 %v1060_v63 }
 0x360   :  { %v1905_v54 = vpop.eup %1904 }
 0x361   :  { %v1076_v43 = vmul.f32 %v1905_v54, %v1058_v14  ;;  %v1062_v56 = vmul.f32 %v1905_v54, %v1044_v15  ;;  %v1064_v44 = vmul.f32 %v1905_v54, %v1046_v16  ;;  %v1063_v37 = vmul.f32 %v1905_v54, %v1045_v17 }
 0x362   :  { %v1065_v39 = vmul.f32 %v1905_v54, %v1047_v18  ;;  %v1066_v23 = vmul.f32 %v1905_v54, %v1048_v19  ;;  %v1067_v34 = vmul.f32 %v1905_v54, %v1049_v24  ;;  %v1068_v12 = vmul.f32 %v1905_v54, %v1050_v27 }
 0x363   :  { %v1078_v50 = vmax.f32 %v1062_v56, 0.0  ;;  %v1080_v7 = vmax.f32 %v1064_v44, 0.0  ;;  %v1079_v46 = vmax.f32 %v1063_v37, 0.0  ;;  %v1069_v31 = vmul.f32 %v1905_v54, %v1051_v30 }
 0x364   :  { %v1081_v62 = vmax.f32 %v1065_v39, 0.0  ;;  %v1082_v29 = vmax.f32 %v1066_v23, 0.0  ;;  %v1070_v47 = vmul.f32 %v1905_v54, %v1052_v32  ;;  %v1071_v52 = vmul.f32 %v1905_v54, %v1053_v33 }
 0x365   :  { %1808 = vmatprep.mubr.msk.f32.mxu0 %vm46_vm0, %v1078_v50  ;;  %1811 = vmatprep.mubr.msk.f32.mxu1 %vm46_vm0, %v1080_v7  ;;  %v1072_v61 = vmul.f32 %v1905_v54, %v1054_v28  ;;  %v1073_v53 = vmul.f32 %v1905_v54, %v1055_v41  ;;  %v1074_v10 = vmul.f32 %v1905_v54, %v1056_v36  ;;  %v1083_v8 = vmax.f32 %v1067_v34, 0.0 }
 0x366   :  { %1809 = vmatmul.mubr.msk.f32.vlgmr.msra.gmra.mrb[32].mxu0 %vm46_vm0, %v1079_v46  ;;  %1812 = vmatmul.mubr.msk.f32.vlgmr.msra.gmra.mrb[16].mxu1 %vm46_vm0, %v1081_v62  ;;  %v1075_v48 = vmul.f32 %v1905_v54, %v1057_v1  ;;  %v1077_v45 = vmul.f32 %v1905_v54, %v1059_v38  ;;  %v1084_v26 = vmax.f32 %v1068_v12, 0.0  ;;  %v1085_v22 = vmax.f32 %v1069_v31, 0.0 }
 0x367   :  { %1814 = vmatprep.mubr.msk.f32.mxu1 %vm46_vm0, %v1082_v29  ;;  %v1086_v42 = vmax.f32 %v1070_v47, 0.0  ;;  %v1087_v40 = vmax.f32 %v1071_v52, 0.0  ;;  %v1088_v13 = vmax.f32 %v1072_v61, 0.0  ;;  %v1089_v55 = vmax.f32 %v1073_v53, 0.0 }
 0x368   :  { %v1090_v57 = vmax.f32 %v1074_v10, 0.0  ;;  %v1091_v11 = vmax.f32 %v1075_v48, 0.0  ;;  %v1092_v58 = vmax.f32 %v1076_v43, 0.0  ;;  %v1093_v25 = vmax.f32 %v1077_v45, 0.0 }
 0x36a   :  { %1815 = vmatmul.mubr.msk.f32.gmra.mrb[18].mxu1 %vm46_vm0, %v1083_v8 }
 0x36b   :  { %1817 = vmatprep.mubr.msk.f32.mxu1 %vm46_vm0, %v1084_v26 }
 0x36e   :  { %1818 = vmatmul.mubr.msk.f32.gmra.mrb[20].mxu1 %vm46_vm0, %v1085_v22 }
 0x36f   :  { %1820 = vmatprep.mubr.msk.f32.mxu1 %vm46_vm0, %v1086_v42 }
 0x372   :  { %1821 = vmatmul.mubr.msk.f32.gmra.mrb[22].mxu1 %vm46_vm0, %v1087_v40 }
 0x373   :  { %1823 = vmatprep.mubr.msk.f32.mxu1 %vm46_vm0, %v1088_v13 }
 0x376   :  { %1824 = vmatmul.mubr.msk.f32.gmra.mrb[24].mxu1 %vm46_vm0, %v1089_v55 }
 0x377   :  { %1826 = vmatprep.mubr.msk.f32.mxu1 %vm46_vm0, %v1090_v57 }
 0x37a   :  { %1827 = vmatmul.mubr.msk.f32.gmra.mrb[26].mxu1 %vm46_vm0, %v1091_v11 }
 0x37b   :  { %1829 = vmatprep.mubr.msk.f32.mxu1 %vm46_vm0, %v1092_v58 }
 0x37e   :  { %1830 = vmatmul.mubr.msk.f32.gmra.mrb[28].mxu1 %vm46_vm0, %v1093_v25 }
 0x439   :  { %v1810_v60 = vpop.f32.mrb[32].mxu0  ;;  %v1813_v35 = vpop.f32.mrb[16].mxu1 }
 0x43a   :  { %v2596_v51 = vadd.f32 %v1810_v60, %v1552_v59  ;;  %v2598_v49 = vadd.f32 %v1813_v35, %v1552_v59  ;;  %v1225_v2 = vpop.f32.mrb[33].mxu0  ;;  %v1235_v0 = vpop.f32.mrb[17].mxu1 }
 0x43b   :  { %v2600_v3 = vadd.f32 %v1552_v59, %v1225_v2  ;;  %v2602_v4 = vadd.f32 %v1552_v59, %v1235_v0 }
 0x43c   :  { %v1314_v5 = vsel %vm1304_vm4, %v2598_v49, -inf  ;;  %v1308_v6 = vsel %vm1304_vm4, %v2596_v51, -inf }
 0x43d   :  { %1315 = vmax.xlane.f32.xlu1 %v1314_v5  ;;  %v1816_v9 = vpop.f32.mrb[18].mxu1  ;;  %1309 = vmax.xlane.f32.xlu0 %v1308_v6  ;;  %v1311_v17 = vsel %vm1304_vm4, %v2602_v4, -inf  ;;  %v1305_v18 = vsel %vm1304_vm4, %v2600_v3, -inf }
 0x43e   :  { %v1245_v14 = vpop.f32.mrb[19].mxu1  ;;  %v2608_v15 = vadd.f32 %v1816_v9, %v1552_v59 }
 0x43f   :  { %v2610_v16 = vadd.f32 %v1552_v59, %v1245_v14 }
 0x440   :  { %v1320_v30 = vsel %vm1304_vm4, %v2608_v15, -inf }
 0x441   :  { %v1819_v19 = vpop.f32.mrb[20].mxu1  ;;  %1312 = vmax.xlane.f32.xlu1 %v1311_v17  ;;  %1306 = vmax.xlane.f32.xlu0 %v1305_v18  ;;  %v1317_v32 = vsel %vm1304_vm4, %v2610_v16, -inf }
 0x442   :  { %v1255_v20 = vpop.f32.mrb[21].mxu1  ;;  %v2616_v24 = vadd.f32 %v1819_v19, %v1552_v59 }
 0x443   :  { %v2618_v27 = vadd.f32 %v1552_v59, %v1255_v20 }
 0x444   :  { %v1326_v36 = vsel %vm1304_vm4, %v2616_v24, -inf }
 0x445   :  { %v1822_v33 = vpop.f32.mrb[22].mxu1  ;;  %1321 = vmax.xlane.f32.xlu1 %v1320_v30  ;;  %1318 = vmax.xlane.f32.xlu0 %v1317_v32  ;;  %v1323_v1 = vsel %vm1304_vm4, %v2618_v27, -inf }
 0x446   :  { %v1265_v28 = vpop.f32.mrb[23].mxu1  ;;  %v2624_v41 = vadd.f32 %v1822_v33, %v1552_v59 }
 0x447   :  { %v2626_v21 = vadd.f32 %v1552_v59, %v1265_v28 }
 0x448   :  { %v1332_v56 = vsel %vm1304_vm4, %v2624_v41, -inf }
 0x449   :  { %v1825_v38 = vpop.f32.mrb[24].mxu1  ;;  %1327 = vmax.xlane.f32.xlu1 %v1326_v36  ;;  %1324 = vmax.xlane.f32.xlu0 %v1323_v1  ;;  %v1329_v44 = vsel %vm1304_vm4, %v2626_v21, -inf }
 0x44a   :  { %v1275_v63 = vpop.f32.mrb[25].mxu1  ;;  %v2632_v54 = vadd.f32 %v1825_v38, %v1552_v59 }
 0x44b   :  { %v2634_v43 = vadd.f32 %v1552_v59, %v1275_v63 }
 0x44c   :  { %v1338_v12 = vsel %vm1304_vm4, %v2632_v54, -inf }
 0x44d   :  { %v1828_v37 = vpop.f32.mrb[26].mxu1  ;;  %1333 = vmax.xlane.f32.xlu1 %v1332_v56  ;;  %1330 = vmax.xlane.f32.xlu0 %v1329_v44  ;;  %v1335_v50 = vsel %vm1304_vm4, %v2634_v43, -inf }
 0x44e   :  { %v1285_v39 = vpop.f32.mrb[27].mxu1  ;;  %v2640_v23 = vadd.f32 %v1828_v37, %v1552_v59 }
 0x44f   :  { %v2642_v34 = vadd.f32 %v1552_v59, %v1285_v39 }
 0x450   :  { %v1344_v31 = vsel %vm1304_vm4, %v2640_v23, -inf }
 0x451   :  { %v1831_v7 = vpop.f32.mrb[28].mxu1  ;;  %1339 = vmax.xlane.f32.xlu1 %v1338_v12  ;;  %1336 = vmax.xlane.f32.xlu0 %v1335_v50  ;;  %v1341_v47 = vsel %vm1304_vm4, %v2642_v34, -inf }
 0x452   :  { %v1295_v46 = vpop.f32.mrb[29].mxu1  ;;  %v2648_v62 = vadd.f32 %v1831_v7, %v1552_v59 }
 0x453   :  { %v2650_v29 = vadd.f32 %v1552_v59, %v1295_v46 }
 0x454   :  { %v1350_v52 = vsel %vm1304_vm4, %v2648_v62, -inf }
 0x455   :  { %1345 = vmax.xlane.f32.xlu1 %v1344_v31  ;;  %1342 = vmax.xlane.f32.xlu0 %v1341_v47  ;;  %v1347_v61 = vsel %vm1304_vm4, %v2650_v29, -inf }
 0x459   :  { %1351 = vmax.xlane.f32.xlu1 %v1350_v52  ;;  %1348 = vmax.xlane.f32.xlu0 %v1347_v61 }
 0x4ca   :  { %v1316_v53 = vpop.xlane.xlu1 %1315  ;;  %v1310_v10 = vpop.xlane.xlu0 %1309 }
 0x4cb   :  { %v1356_v48 = vsub.f32 %v2598_v49, %v1316_v53  ;;  %v1354_v8 = vsub.f32 %v2596_v51, %v1310_v10 }
 0x4cd   :  { %v1375_v45 = vmul.f32 1.442695, %v1356_v48  ;;  %v1371_v26 = vmul.f32 1.442695, %v1354_v8 }
 0x4ce   :  { %v1313_v22 = vpop.xlane.xlu1 %1312  ;;  %v1307_v42 = vpop.xlane.xlu0 %1306 }
 0x4cf   :  { %v1355_v40 = vsub.f32 %v2602_v4, %v1313_v22  ;;  %v1353_v13 = vsub.f32 %v2600_v3, %v1307_v42  ;;  %1906 = vpow2.f32 %v1371_v26 }
 0x4d0   :  { %1908 = vpow2.f32 %v1375_v45 }
 0x4d1   :  { %v1369_v55 = vmul.f32 1.442695, %v1353_v13  ;;  %v1373_v57 = vmul.f32 1.442695, %v1355_v40 }
 0x4d2   :  { %v1322_v11 = vpop.xlane.xlu1 %1321  ;;  %v1319_v58 = vpop.xlane.xlu0 %1318 }
 0x4d3   :  { %v1358_v25 = vsub.f32 %v2608_v15, %v1322_v11  ;;  %v1357_v59 = vsub.f32 %v2610_v16, %v1319_v58  ;;  %1910 = vpow2.f32 %v1369_v55 }
 0x4d4   :  { %1912 = vpow2.f32 %v1373_v57 }
 0x4d5   :  { %v1379_v60 = vmul.f32 1.442695, %v1358_v25  ;;  %v1377_v35 = vmul.f32 1.442695, %v1357_v59 }
 0x4d6   :  { %v1328_v51 = vpop.xlane.xlu1 %1327  ;;  %v1325_v49 = vpop.xlane.xlu0 %1324 }
 0x4d7   :  { %1914 = vpow2.f32 %v1379_v60  ;;  %v1360_v2 = vsub.f32 %v2616_v24, %v1328_v51  ;;  %v1359_v0 = vsub.f32 %v2618_v27, %v1325_v49 }
 0x4d8   :  { %1916 = vpow2.f32 %v1377_v35 }
 0x4d9   :  { %v1383_v3 = vmul.f32 1.442695, %v1360_v2  ;;  %v2668_v4 = vpop.eup %1906  ;;  %v1381_v5 = vmul.f32 1.442695, %v1359_v0 }
 0x4da   :  { %v1334_v6 = vpop.xlane.xlu1 %1333  ;;  %v1331_v9 = vpop.xlane.xlu0 %1330  ;;  %v1404_v17 = vsel %vm1304_vm4, %v2668_v4, 0.0 }
 0x4db   :  { %v2670_v14 = vpop.eup %1908  ;;  %1918 = vpow2.f32 %v1383_v3  ;;  %v1362_v15 = vsub.f32 %v2624_v41, %v1334_v6  ;;  %v1361_v16 = vsub.f32 %v2626_v21, %v1331_v9  ;;  %1405 = vadd.xlane.f32.xlu1 %v1404_v17 }
 0x4dc   :  { %1920 = vpow2.f32 %v1381_v5  ;;  %v1410_v30 = vsel %vm1304_vm4, %v2670_v14, 0.0 }
 0x4dd   :  { %v1387_v18 = vmul.f32 1.442695, %v1362_v15  ;;  %v2676_v19 = vpop.eup %1910  ;;  %v1385_v20 = vmul.f32 1.442695, %v1361_v16 }
 0x4de   :  { %v1340_v24 = vpop.xlane.xlu1 %1339  ;;  %v1337_v27 = vpop.xlane.xlu0 %1336  ;;  %v1401_v28 = vsel %vm1304_vm4, %v2676_v19, 0.0 }
 0x4df   :  { %1922 = vpow2.f32 %v1387_v18  ;;  %v1364_v32 = vsub.f32 %v2632_v54, %v1340_v24  ;;  %v1363_v33 = vsub.f32 %v2634_v43, %v1337_v27  ;;  %v2684_v41 = vpop.eup %1912  ;;  %1411 = vadd.xlane.f32.xlu1 %v1410_v30  ;;  %1402 = vadd.xlane.f32.xlu0 %v1401_v28 }
 0x4e0   :  { %1924 = vpow2.f32 %v1385_v20  ;;  %v1407_v44 = vsel %vm1304_vm4, %v2684_v41, 0.0 }
 0x4e1   :  { %v2686_v21 = vpop.eup %1914  ;;  %v1391_v36 = vmul.f32 1.442695, %v1364_v32  ;;  %v1389_v1 = vmul.f32 1.442695, %v1363_v33 }
 0x4e2   :  { %v1346_v38 = vpop.xlane.xlu1 %1345  ;;  %v1343_v63 = vpop.xlane.xlu0 %1342  ;;  %v1416_v56 = vsel %vm1304_vm4, %v2686_v21, 0.0 }
 0x4e3   :  { %1926 = vpow2.f32 %v1391_v36  ;;  %v1366_v54 = vsub.f32 %v2640_v23, %v1346_v38  ;;  %v1365_v43 = vsub.f32 %v2642_v34, %v1343_v63  ;;  %v2694_v37 = vpop.eup %1916  ;;  %1417 = vadd.xlane.f32.xlu1 %v1416_v56  ;;  %1408 = vadd.xlane.f32.xlu0 %v1407_v44 }
 0x4e4   :  { %1928 = vpow2.f32 %v1389_v1  ;;  %v1413_v47 = vsel %vm1304_vm4, %v2694_v37, 0.0 }
 0x4e5   :  { %v2696_v39 = vpop.eup %1918  ;;  %v1395_v12 = vmul.f32 1.442695, %v1366_v54  ;;  %v1393_v50 = vmul.f32 1.442695, %v1365_v43 }
 0x4e6   :  { %v1352_v7 = vpop.xlane.xlu1 %1351  ;;  %v1349_v46 = vpop.xlane.xlu0 %1348  ;;  %v1422_v31 = vsel %vm1304_vm4, %v2696_v39, 0.0 }
 0x4e7   :  { %1930 = vpow2.f32 %v1395_v12  ;;  %v1368_v23 = vsub.f32 %v2648_v62, %v1352_v7  ;;  %v1367_v34 = vsub.f32 %v2650_v29, %v1349_v46  ;;  %v2704_v52 = vpop.eup %1920  ;;  %1423 = vadd.xlane.f32.xlu1 %v1422_v31  ;;  %1414 = vadd.xlane.f32.xlu0 %v1413_v47 }
 0x4e8   :  { %1932 = vpow2.f32 %v1393_v50  ;;  %v1419_v62 = vsel %vm1304_vm4, %v2704_v52, 0.0 }
 0x4e9   :  { %v2706_v61 = vpop.eup %1922  ;;  %v1399_v53 = vmul.f32 1.442695, %v1368_v23  ;;  %v1397_v10 = vmul.f32 1.442695, %v1367_v34 }
 0x4ea   :  { %v1428_v48 = vsel %vm1304_vm4, %v2706_v61, 0.0  ;;  %v2712_v29 = vpop.eup %1924 }
 0x4eb   :  { %1934 = vpow2.f32 %v1399_v53  ;;  %1429 = vadd.xlane.f32.xlu1 %v1428_v48  ;;  %1420 = vadd.xlane.f32.xlu0 %v1419_v62  ;;  %v1425_v26 = vsel %vm1304_vm4, %v2712_v29, 0.0 }
 0x4ec   :  { %1936 = vpow2.f32 %v1397_v10 }
 0x4ed   :  { %v2714_v8 = vpop.eup %1926 }
 0x4ee   :  { %v1434_v45 = vsel %vm1304_vm4, %v2714_v8, 0.0  ;;  %v2720_v22 = vpop.eup %1928 }
 0x4ef   :  { %1435 = vadd.xlane.f32.xlu1 %v1434_v45  ;;  %1426 = vadd.xlane.f32.xlu0 %v1425_v26  ;;  %v1431_v13 = vsel %vm1304_vm4, %v2720_v22, 0.0 }
 0x4f1   :  { %v2722_v42 = vpop.eup %1930 }
 0x4f2   :  { %v1440_v40 = vsel %vm1304_vm4, %v2722_v42, 0.0  ;;  %v2728_v55 = vpop.eup %1932 }
 0x4f3   :  { %1441 = vadd.xlane.f32.xlu1 %v1440_v40  ;;  %1432 = vadd.xlane.f32.xlu0 %v1431_v13  ;;  %v1437_v58 = vsel %vm1304_vm4, %v2728_v55, 0.0 }
 0x4f5   :  { %v2730_v57 = vpop.eup %1934 }
 0x4f6   :  { %v1446_v11 = vsel %vm1304_vm4, %v2730_v57, 0.0  ;;  %v2736_v25 = vpop.eup %1936 }
 0x4f7   :  { %1447 = vadd.xlane.f32.xlu1 %v1446_v11  ;;  %1438 = vadd.xlane.f32.xlu0 %v1437_v58  ;;  %v1443_v59 = vsel %vm1304_vm4, %v2736_v25, 0.0 }
 0x4fb   :  { %1444 = vadd.xlane.f32.xlu0 %v1443_v59 }
 0x568   :  { %v1406_v60 = vpop.xlane.xlu1 %1405 }
 0x569   :  { %1938 = vrcp.f32 %v1406_v60 }
 0x56c   :  { %v1412_v35 = vpop.xlane.xlu1 %1411  ;;  %v1403_v51 = vpop.xlane.xlu0 %1402 }
 0x56d   :  { %1940 = vrcp.f32 %v1412_v35 }
 0x56e   :  { %1942 = vrcp.f32 %v1403_v51 }
 0x570   :  { %v1418_v49 = vpop.xlane.xlu1 %1417  ;;  %v1409_v2 = vpop.xlane.xlu0 %1408 }
 0x571   :  { %1944 = vrcp.f32 %v1418_v49 }
 0x572   :  { %1946 = vrcp.f32 %v1409_v2 }
 0x573   :  { %v1939_v0 = vpop.eup %1938 }
 0x574   :  { %v1466_v3 = vmul.f32 %v1939_v0, %v2668_v4  ;;  %v1424_v5 = vpop.xlane.xlu1 %1423  ;;  %v1415_v6 = vpop.xlane.xlu0 %1414 }
 0x575   :  { %1948 = vrcp.f32 %v1424_v5 }
 0x576   :  { %1482 = vst.msk [vmem:[%s2826_s6 + $0x8] sm:$0xff] %vm1304_vm4, %v1466_v3  ;;  %1950 = vrcp.f32 %v1415_v6 }
 0x577   :  { %v1941_v9 = vpop.eup %1940 }
 0x578   :  { %v1943_v15 = vpop.eup %1942  ;;  %v1468_v16 = vmul.f32 %v1941_v9, %v2670_v14  ;;  %v1430_v17 = vpop.xlane.xlu1 %1429 }
 0x579   :  { %v1421_v18 = vpop.xlane.xlu0 %1420  ;;  %v1465_v20 = vmul.f32 %v1943_v15, %v2676_v19  ;;  %1952 = vrcp.f32 %v1430_v17 }
 0x57a   :  { %1484 = vst.msk [vmem:[%s2826_s6 + $0x18] sm:$0xff] %vm1304_vm4, %v1468_v16  ;;  %1954 = vrcp.f32 %v1421_v18 }
 0x57b   :  { %v1945_v4 = vpop.eup %1944  ;;  %1481 = vst.msk [vmem:[%s2826_s6] sm:$0xff] %vm1304_vm4, %v1465_v20 }
 0x57c   :  { %v1947_v24 = vpop.eup %1946  ;;  %v1470_v14 = vmul.f32 %v1945_v4, %v2686_v21  ;;  %v1436_v27 = vpop.xlane.xlu1 %1435 }
 0x57d   :  { %v1427_v30 = vpop.xlane.xlu0 %1426  ;;  %v1467_v19 = vmul.f32 %v1947_v24, %v2684_v41  ;;  %1956 = vrcp.f32 %v1436_v27 }
 0x57e   :  { %1486 = vst.msk [vmem:[%s2826_s6 + $0x28] sm:$0xff] %vm1304_vm4, %v1470_v14  ;;  %1958 = vrcp.f32 %v1427_v30 }
 0x57f   :  { %v1949_v32 = vpop.eup %1948  ;;  %1483 = vst.msk [vmem:[%s2826_s6 + $0x10] sm:$0xff] %vm1304_vm4, %v1467_v19 }
 0x580   :  { %v1951_v33 = vpop.eup %1950  ;;  %v1472_v28 = vmul.f32 %v1949_v32, %v2696_v39  ;;  %v1442_v21 = vpop.xlane.xlu1 %1441 }
 0x581   :  { %v1433_v36 = vpop.xlane.xlu0 %1432  ;;  %v1469_v41 = vmul.f32 %v1951_v33, %v2694_v37  ;;  %1960 = vrcp.f32 %v1442_v21 }
 0x582   :  { %1488 = vst.msk [vmem:[%s2826_s6 + $0x38] sm:$0xff] %vm1304_vm4, %v1472_v28  ;;  %1962 = vrcp.f32 %v1433_v36 }
 0x583   :  { %v1953_v1 = vpop.eup %1952  ;;  %1485 = vst.msk [vmem:[%s2826_s6 + $0x20] sm:$0xff] %vm1304_vm4, %v1469_v41 }
 0x584   :  { %v1955_v38 = vpop.eup %1954  ;;  %v1474_v63 = vmul.f32 %v1953_v1, %v2706_v61  ;;  %v1448_v56 = vpop.xlane.xlu1 %1447 }
 0x585   :  { %v1439_v54 = vpop.xlane.xlu0 %1438  ;;  %v1471_v43 = vmul.f32 %v1955_v38, %v2704_v52  ;;  %1964 = vrcp.f32 %v1448_v56 }
 0x586   :  { %1490 = vst.msk [vmem:[%s2826_s6 + $0x48] sm:$0xff] %vm1304_vm4, %v1474_v63  ;;  %1966 = vrcp.f32 %v1439_v54 }
 0x587   :  { %v1957_v44 = vpop.eup %1956  ;;  %1487 = vst.msk [vmem:[%s2826_s6 + $0x30] sm:$0xff] %vm1304_vm4, %v1471_v43 }
 0x588   :  { %v1959_v37 = vpop.eup %1958  ;;  %v1476_v39 = vmul.f32 %v1957_v44, %v2714_v8 }
 0x589   :  { %v1445_v12 = vpop.xlane.xlu0 %1444  ;;  %v1473_v50 = vmul.f32 %v1959_v37, %v2712_v29 }
 0x58a   :  { %1968 = vrcp.f32 %v1445_v12  ;;  %1492 = vst.msk [vmem:[%s2826_s6 + $0x58] sm:$0xff] %vm1304_vm4, %v1476_v39 }
 0x58b   :  { %v1961_v7 = vpop.eup %1960  ;;  %1489 = vst.msk [vmem:[%s2826_s6 + $0x40] sm:$0xff] %vm1304_vm4, %v1473_v50 }
 0x58c   :  { %v1963_v46 = vpop.eup %1962  ;;  %v1478_v31 = vmul.f32 %v1961_v7, %v2722_v42 }
 0x58d   :  { %v1475_v23 = vmul.f32 %v1963_v46, %v2720_v22 }
 0x58e   :  { %1494 = vst.msk [vmem:[%s2826_s6 + $0x68] sm:$0xff] %vm1304_vm4, %v1478_v31 }
 0x58f   :  { %v1965_v34 = vpop.eup %1964  ;;  %1491 = vst.msk [vmem:[%s2826_s6 + $0x50] sm:$0xff] %vm1304_vm4, %v1475_v23 }
 0x590   :  { %v1967_v47 = vpop.eup %1966  ;;  %v1480_v52 = vmul.f32 %v1965_v34, %v2730_v57 }
 0x591   :  { %v1477_v61 = vmul.f32 %v1967_v47, %v2728_v55 }
 0x592   :  { %1496 = vst.msk [vmem:[%s2826_s6 + $0x78] sm:$0xff] %vm1304_vm4, %v1480_v52 }
 0x593   :  { %1493 = vst.msk [vmem:[%s2826_s6 + $0x60] sm:$0xff] %vm1304_vm4, %v1477_v61 }
 0x594   :  { %v1969_v53 = vpop.eup %1968 }
 0x595   :  { %v1479_v10 = vmul.f32 %v1969_v53, %v2736_v25 }
 0x597   :  { %1495 = vst.msk [vmem:[%s2826_s6 + $0x70] sm:$0xff] %vm1304_vm4, %v1479_v10 }

</bundles_post_ra>
